<compile_context>
chip_gen: v7x
topology: tpu7x:2x2x1
jax: 0.10.0
libtpu: 0.0.40
codegen_flags: <defaults>
</compile_context>

<pallas_src>
import jax
import jax.numpy as jnp
from jax import lax
from jax.experimental import pallas as pl
from jax.experimental.pallas import tpu as pltpu


# ----------------------------------------------------------------------------
# Fused kernel: rgb->gray, one-hot (implicit), get_edges, 3x3 conv + tanh.
# ----------------------------------------------------------------------------
def _make_fused_kernel(nc: int, oc: int, H: int, W: int, th: int):
    C = nc + 1          # semantic channels: nc one-hot + 1 instance-edge
    SENT = nc           # sentinel class: never matches any c in [0, nc)

    def kernel(label_ref, inst_ref, w_ref, b_ref, out_ref):
        # label_ref: (1, 3, H+2, W) f32   (zero-padded 1 row top/bottom)
        # inst_ref : (1, 1, H+4, W) i32   (edge-replicated 2 rows top/bottom)
        # w_ref    : SMEM (oc*C*9,) f32   (OC, C, 3, 3) row-major
        # b_ref    : SMEM (oc,) f32
        # out_ref  : (1, oc, th, W) f32
        h = pl.program_id(1)
        row0 = pl.multiple_of(h * th, th)            # tile start in padded coords

        # ---- label.long() -> torchvision rgb_to_grayscale (truncating cast,
        #      matching .to(int64)) -> integer class map over halo'd tile ------
        r = label_ref[0, 0, pl.ds(row0, th + 2), :].astype(jnp.int32).astype(jnp.float32)
        g = label_ref[0, 1, pl.ds(row0, th + 2), :].astype(jnp.int32).astype(jnp.float32)
        b = label_ref[0, 2, pl.ds(row0, th + 2), :].astype(jnp.int32).astype(jnp.float32)
        gray = (0.2989 * r + 0.587 * g + 0.114 * b).astype(jnp.int32)
        # torch scatter_ with out-of-range index is UB; clamp to a valid class.
        gray = jnp.clip(gray, 0, nc - 1)

        # Out-of-image rows (conv zero padding) -> sentinel class; applied ONCE.
        gl_row = lax.broadcasted_iota(jnp.int32, (th + 2, W), 0) + (h * th - 1)
        col = lax.broadcasted_iota(jnp.int32, (th + 2, W), 1)
        in_img = (gl_row >= 0) & (gl_row < H)
        gray = jnp.where(in_img, gray, SENT)

        # W-shifted copies (lane rolls on the XLU; wrap column -> sentinel).
        gray_w = {
            -1: jnp.where(col >= 1, pltpu.roll(gray, shift=1, axis=1), SENT),
            0: gray,
            1: jnp.where(col <= W - 2, pltpu.roll(gray, shift=W - 1, axis=1), SENT),
        }

        # ---- get_edges(instance) over the halo'd tile ------------------------
        t = inst_ref[0, 0, pl.ds(row0, th + 4), :]   # (th+4, W) i32
        tc = t[1:th + 3, :]                          # rows where edge is needed
        d_l = (tc != pltpu.roll(tc, shift=1, axis=1)) & (col >= 1)
        d_r = (tc != pltpu.roll(tc, shift=W - 1, axis=1)) & (col <= W - 2)
        # replicate-padded halo rows => no spurious edges at the image boundary
        e = (tc != t[0:th + 2, :]) | (tc != t[2:th + 4, :]) | d_l | d_r
        edge = (e & in_img).astype(jnp.float32)      # 0 outside the image
        edge_w = {
            -1: jnp.where(col >= 1, pltpu.roll(edge, shift=1, axis=1), 0.0),
            0: edge,
            1: jnp.where(col <= W - 2, pltpu.roll(edge, shift=W - 1, axis=1), 0.0),
        }

        # ---- 18 shifted planes total (9 per map), not 9*(nc+1) --------------
        gray_taps, edge_taps = [], []
        for dh in (-1, 0, 1):
            for dw in (-1, 0, 1):
                gray_taps.append(gray_w[dw][1 + dh:1 + dh + th, :])
                edge_taps.append(edge_w[dw][1 + dh:1 + dh + th, :])

        # ---- 3x3 conv (pad=1) + bias + tanh ---------------------------------
        accs = [jnp.full((th, W), b_ref[o], jnp.float32) for o in range(oc)]

        # instance-edge channel (semantic channel index nc)
        for ti in range(9):
            et = edge_taps[ti]
            for o in range(oc):
                accs[o] = accs[o] + w_ref[(o * C + nc) * 9 + ti] * et

        # one-hot channels: fori_loop over classes keeps live ranges bounded at
        # production nc~36; compare shared across outputs, select-accumulate.
        def class_body(c, carry):
            acc = list(carry)
            for ti in range(9):
                m = gray_taps[ti] == c
                for o in range(oc):
                    w = w_ref[o * C * 9 + c * 9 + ti]     # SMEM, dynamic index
                    acc[o] = acc[o] + jnp.where(m, w, 0.0)
            return tuple(acc)

        accs = lax.fori_loop(0, nc, class_body, tuple(accs))

        for o in range(oc):
            out_ref[0, o] = jnp.tanh(accs[o])

    return kernel


def fused_preprocess_and_generate(label, instance, weight, bias, nc, tile_h=8):
    """label: (B,3,H,W); instance: (B,1,H,W); weight: (OC, nc+1, 3, 3); bias: (OC,)."""
    B, _, H, W = label.shape
    OC = weight.shape[0]
    assert weight.shape == (OC, nc + 1, 3, 3)
    tile_h = min(tile_h, H)
    assert H % tile_h == 0 and (tile_h % 8 == 0 or tile_h == H)
    # For lane-dense (unmasked) stores, W should be a multiple of 128 in prod.

    # Halo realized via wrapper-side H padding (cheap HBM pads), so in-kernel
    # row slices never need clamping:
    #   label: +1 row each side (zero; masked to the sentinel class in-kernel)
    #   instance: +2 rows each side, edge-replicated (no spurious boundary edges)
    label_p = jnp.pad(label.astype(jnp.float32), ((0, 0), (0, 0), (1, 1), (0, 0)))
    inst_p = jnp.pad(instance.astype(jnp.int32), ((0, 0), (0, 0), (2, 2), (0, 0)),
                     mode='edge')

    kernel = _make_fused_kernel(nc, OC, H, W, tile_h)
    return pl.pallas_call(
        kernel,
        out_shape=jax.ShapeDtypeStruct((B, OC, H, W), jnp.float32),
        grid=(B, H // tile_h),
        in_specs=[
            # Full (small) input planes stay block-index-invariant along the h
            # axis -> fetched once per batch element, sliced in-kernel.
            pl.BlockSpec((1, 3, H + 2, W), lambda b, h: (b, 0, 0, 0)),
            pl.BlockSpec((1, 1, H + 4, W), lambda b, h: (b, 0, 0, 0)),
            pl.BlockSpec(memory_space=pltpu.MemorySpace.SMEM),   # flattened conv weights
            pl.BlockSpec(memory_space=pltpu.MemorySpace.SMEM),   # bias
        ],
        out_specs=pl.BlockSpec((1, OC, tile_h, W), lambda b, h: (b, 0, h, 0)),
        compiler_params=pltpu.CompilerParams(
            # (B, h-tiles) both parallel: feeds both v7x TensorCores even at B=1.
            dimension_semantics=("parallel", "parallel"),
            # Safe on all generations; raise toward ~64-100 MiB on v5e/v6e for
            # larger tiles (128 MiB physical VMEM there, 64 MiB on v7x).
            vmem_limit_bytes=32 * 1024 * 1024),
    )(label_p, inst_p,
      weight.reshape(-1).astype(jnp.float32),
      bias.astype(jnp.float32))


# ----------------------------------------------------------------------------
# Pure-JAX reference of the same forward (used only for self-verification).
# ----------------------------------------------------------------------------
def _reference_forward(data, weight, bias, nc):
    label = data['label'].astype(jnp.int32).astype(jnp.float32)
    gray = (0.2989 * label[:, 0] + 0.587 * label[:, 1]
            + 0.114 * label[:, 2]).astype(jnp.int32)      # truncating cast (.to(long))
    gray = jnp.clip(gray, 0, nc - 1)                       # (B, H, W)
    onehot = jax.nn.one_hot(gray, nc, axis=1, dtype=jnp.float32)

    t = data['instance'].astype(jnp.int32)
    e = jnp.zeros(t.shape, jnp.bool_)
    d_w = t[:, :, :, 1:] != t[:, :, :, :-1]
    d_h = t[:, :, 1:, :] != t[:, :, :-1, :]
    e = e.at[:, :, :, 1:].set(e[:, :, :, 1:] | d_w)
    e = e.at[:, :, :, :-1].set(e[:, :, :, :-1] | d_w)
    e = e.at[:, :, 1:, :].set(e[:, :, 1:, :] | d_h)
    e = e.at[:, :, :-1, :].set(e[:, :, :-1, :] | d_h)

    sem = jnp.concatenate([onehot, e.astype(jnp.float32)], axis=1)
    out = lax.conv_general_dilated(sem, weight, (1, 1), ((1, 1), (1, 1)),
                                   dimension_numbers=('NCHW', 'OIHW', 'NCHW'),
                                   precision=lax.Precision.HIGHEST)
    return jnp.tanh(out + bias[None, :, None, None])


# ----------------------------------------------------------------------------
# Pix2PixModel (inference path only)
# ----------------------------------------------------------------------------
class Opt:
    def __init__(self):
        self.label_nc = 4
        self.contain_dontcare_label = False
        self.no_instance = False
        self.use_vae = False
        self.isTrain = False
        self.gpu_ids = []


class Pix2PixModelPallas:
    def __init__(self, opt, key):
        self.opt = opt
        self.label_nc_total = opt.label_nc + (1 if opt.contain_dontcare_label else 0)
        self.semantic_nc = self.label_nc_total + (0 if opt.no_instance else 1)
        # deterministic synthetic generator-head parameters (stand-in for SPADEGenerator)
        kw, kb = jax.random.split(key)
        self.g_weight = 0.1 * jax.random.normal(
            kw, (3, self.semantic_nc, 3, 3), dtype=jnp.float32)
        self.g_bias = 0.01 * jax.random.normal(kb, (3,), dtype=jnp.float32)

    def forward(self, data, mode):
        if mode == 'inference':
            # preprocess_input (rgb->gray, one-hot scatter, get_edges, concat) and
            # generate_fake (netG head) fused into a single Pallas kernel:
            # input_semantics never touches HBM.
            return fused_preprocess_and_generate(
                data['label'], data['instance'],
                self.g_weight, self.g_bias, self.label_nc_total, tile_h=8)
        raise ValueError('|mode| is invalid (only inference implemented)')


# ----------------------------------------------------------------------------
if __name__ == "__main__":
    key = jax.random.PRNGKey(0)
    k_label, k_inst, k_img, k_params = jax.random.split(key, 4)

    B, H, W = 2, 16, 128   # W=128 -> lane-dense output stores
    opt = Opt()

    data = {
        'label': jax.random.randint(
            k_label, (B, 3, H, W), 0, opt.label_nc).astype(jnp.float32),
        'instance': jax.random.randint(
            k_inst, (B, 1, H, W), 0, 3).astype(jnp.float32),
        'image': jax.random.normal(k_img, (B, 3, H, W), dtype=jnp.float32),
    }

    model = Pix2PixModelPallas(opt, k_params)
    fake_image = model.forward(data, mode='inference')
    jax.block_until_ready(fake_image)

    assert fake_image.shape == (B, 3, H, W)
    assert fake_image.dtype == jnp.float32

    ref = _reference_forward(data, model.g_weight, model.g_bias, model.label_nc_total)
    max_err = float(jnp.max(jnp.abs(fake_image - ref)))
    assert jnp.allclose(fake_image, ref, atol=1e-4, rtol=1e-4), max_err

    print("KERNEL_OK")
</pallas_src>

<mosaic_0001>
module attributes {stable_mosaic.version = 11 : i64} {
  func.func @kernel(%arg0: i32, %arg1: i32, %arg2: memref<1x3x18x128xf32, #tpu.memory_space<vmem>>, %arg3: memref<1x1x20x128xi32, #tpu.memory_space<vmem>>, %arg4: memref<135xf32, #tpu.memory_space<smem>>, %arg5: memref<3xf32, #tpu.memory_space<smem>>, %arg6: memref<1x3x8x128xf32, #tpu.memory_space<vmem>>) attributes {dimension_semantics = [#tpu.dimension_semantics<parallel>, #tpu.dimension_semantics<parallel>], iteration_bounds = array<i64: 2, 2>, scalar_prefetch = 0 : i64, scratch_operands = 0 : i64, tpu.core_type = #tpu.core_type<tc>, window_params = [{transform_indices = @transform_0, window_bounds = array<i64: 1, 3, 18, 128>}, {transform_indices = @transform_1, window_bounds = array<i64: 1, 1, 20, 128>}, {transform_indices = @transform_2, window_bounds = array<i64: 135>}, {transform_indices = @transform_3, window_bounds = array<i64: 3>}, {transform_indices = @transform_4, window_bounds = array<i64: 1, 3, 8, 128>}]} {
    %c8_i32 = arith.constant 8 : i32
    %0 = arith.muli %arg1, %c8_i32 : i32
    %1 = tpu.assume_multiple %0, 8 : i32
    %c0 = arith.constant 0 : index
    %c0_0 = arith.constant 0 : index
    %2 = arith.index_cast %1 : i32 to index
    %c0_1 = arith.constant 0 : index
    %3 = vector.load %arg2[%c0, %c0_0, %2, %c0_1] : memref<1x3x18x128xf32, #tpu.memory_space<vmem>>, vector<1x1x10x128xf32>
    %4 = vector.shape_cast %3 : vector<1x1x10x128xf32> to vector<10x128xf32>
    %5 = arith.fptosi %4 : vector<10x128xf32> to vector<10x128xi32>
    %6 = arith.sitofp %5 : vector<10x128xi32> to vector<10x128xf32>
    %c0_2 = arith.constant 0 : index
    %c1 = arith.constant 1 : index
    %7 = arith.index_cast %1 : i32 to index
    %c0_3 = arith.constant 0 : index
    %8 = vector.load %arg2[%c0_2, %c1, %7, %c0_3] : memref<1x3x18x128xf32, #tpu.memory_space<vmem>>, vector<1x1x10x128xf32>
    %9 = vector.shape_cast %8 : vector<1x1x10x128xf32> to vector<10x128xf32>
    %10 = arith.fptosi %9 : vector<10x128xf32> to vector<10x128xi32>
    %11 = arith.sitofp %10 : vector<10x128xi32> to vector<10x128xf32>
    %c0_4 = arith.constant 0 : index
    %c2 = arith.constant 2 : index
    %12 = arith.index_cast %1 : i32 to index
    %c0_5 = arith.constant 0 : index
    %13 = vector.load %arg2[%c0_4, %c2, %12, %c0_5] : memref<1x3x18x128xf32, #tpu.memory_space<vmem>>, vector<1x1x10x128xf32>
    %14 = vector.shape_cast %13 : vector<1x1x10x128xf32> to vector<10x128xf32>
    %15 = arith.fptosi %14 : vector<10x128xf32> to vector<10x128xi32>
    %16 = arith.sitofp %15 : vector<10x128xi32> to vector<10x128xf32>
    %cst = arith.constant 2.989000e-01 : f32
    %17 = vector.broadcast %cst : f32 to vector<10x128xf32>
    %18 = arith.mulf %17, %6 : vector<10x128xf32>
    %cst_6 = arith.constant 5.870000e-01 : f32
    %19 = vector.broadcast %cst_6 : f32 to vector<10x128xf32>
    %20 = arith.mulf %19, %11 : vector<10x128xf32>
    %21 = arith.addf %18, %20 : vector<10x128xf32>
    %cst_7 = arith.constant 1.140000e-01 : f32
    %22 = vector.broadcast %cst_7 : f32 to vector<10x128xf32>
    %23 = arith.mulf %22, %16 : vector<10x128xf32>
    %24 = arith.addf %21, %23 : vector<10x128xf32>
    %25 = arith.fptosi %24 : vector<10x128xf32> to vector<10x128xi32>
    %c0_i32 = arith.constant 0 : i32
    %c3_i32 = arith.constant 3 : i32
    %26 = vector.broadcast %c0_i32 : i32 to vector<10x128xi32>
    %27 = arith.maxsi %26, %25 : vector<10x128xi32>
    %28 = vector.broadcast %c3_i32 : i32 to vector<10x128xi32>
    %29 = arith.minsi %28, %27 : vector<10x128xi32>
    %30 = tpu.iota {dimensions = array<i32: 0>} : vector<10x128xi32>
    %c8_i32_8 = arith.constant 8 : i32
    %31 = arith.muli %arg1, %c8_i32_8 : i32
    %c1_i32 = arith.constant 1 : i32
    %32 = arith.subi %31, %c1_i32 : i32
    %33 = vector.broadcast %32 : i32 to vector<10x128xi32>
    %34 = arith.addi %30, %33 : vector<10x128xi32>
    %35 = tpu.iota {dimensions = array<i32: 1>} : vector<10x128xi32>
    %c0_i32_9 = arith.constant 0 : i32
    %36 = vector.broadcast %c0_i32_9 : i32 to vector<10x128xi32>
    %37 = arith.cmpi sge, %34, %36 : vector<10x128xi32>
    %c16_i32 = arith.constant 16 : i32
    %38 = vector.broadcast %c16_i32 : i32 to vector<10x128xi32>
    %39 = arith.cmpi slt, %34, %38 : vector<10x128xi32>
    %40 = arith.andi %37, %39 : vector<10x128xi1>
    %c4_i32 = arith.constant 4 : i32
    %41 = vector.broadcast %c4_i32 : i32 to vector<10x128xi32>
    %42 = arith.select %40, %29, %41 : vector<10x128xi1>, vector<10x128xi32>
    %c1_i32_10 = arith.constant 1 : i32
    %43 = vector.broadcast %c1_i32_10 : i32 to vector<10x128xi32>
    %44 = arith.cmpi sge, %35, %43 : vector<10x128xi32>
    %c1_i32_11 = arith.constant 1 : i32
    %45 = tpu.dynamic_rotate %42 by %c1_i32_11 dim 1 : vector<10x128xi32>, i32 -> vector<10x128xi32>
    %c4_i32_12 = arith.constant 4 : i32
    %46 = vector.broadcast %c4_i32_12 : i32 to vector<10x128xi32>
    %47 = arith.select %44, %45, %46 : vector<10x128xi1>, vector<10x128xi32>
    %c126_i32 = arith.constant 126 : i32
    %48 = vector.broadcast %c126_i32 : i32 to vector<10x128xi32>
    %49 = arith.cmpi sle, %35, %48 : vector<10x128xi32>
    %c127_i32 = arith.constant 127 : i32
    %50 = tpu.dynamic_rotate %42 by %c127_i32 dim 1 : vector<10x128xi32>, i32 -> vector<10x128xi32>
    %c4_i32_13 = arith.constant 4 : i32
    %51 = vector.broadcast %c4_i32_13 : i32 to vector<10x128xi32>
    %52 = arith.select %49, %50, %51 : vector<10x128xi1>, vector<10x128xi32>
    %c0_14 = arith.constant 0 : index
    %c0_15 = arith.constant 0 : index
    %53 = arith.index_cast %1 : i32 to index
    %c0_16 = arith.constant 0 : index
    %54 = vector.load %arg3[%c0_14, %c0_15, %53, %c0_16] : memref<1x1x20x128xi32, #tpu.memory_space<vmem>>, vector<1x1x12x128xi32>
    %55 = vector.shape_cast %54 : vector<1x1x12x128xi32> to vector<12x128xi32>
    %56 = vector.extract_strided_slice %55 {offsets = [1, 0], sizes = [10, 128], strides = [1, 1]} : vector<12x128xi32> to vector<10x128xi32>
    %c1_i32_17 = arith.constant 1 : i32
    %57 = tpu.dynamic_rotate %56 by %c1_i32_17 dim 1 : vector<10x128xi32>, i32 -> vector<10x128xi32>
    %58 = arith.cmpi ne, %56, %57 : vector<10x128xi32>
    %c1_i32_18 = arith.constant 1 : i32
    %59 = vector.broadcast %c1_i32_18 : i32 to vector<10x128xi32>
    %60 = arith.cmpi sge, %35, %59 : vector<10x128xi32>
    %61 = arith.andi %58, %60 : vector<10x128xi1>
    %c127_i32_19 = arith.constant 127 : i32
    %62 = tpu.dynamic_rotate %56 by %c127_i32_19 dim 1 : vector<10x128xi32>, i32 -> vector<10x128xi32>
    %63 = arith.cmpi ne, %56, %62 : vector<10x128xi32>
    %c126_i32_20 = arith.constant 126 : i32
    %64 = vector.broadcast %c126_i32_20 : i32 to vector<10x128xi32>
    %65 = arith.cmpi sle, %35, %64 : vector<10x128xi32>
    %66 = arith.andi %63, %65 : vector<10x128xi1>
    %67 = vector.extract_strided_slice %55 {offsets = [0, 0], sizes = [10, 128], strides = [1, 1]} : vector<12x128xi32> to vector<10x128xi32>
    %68 = arith.cmpi ne, %56, %67 : vector<10x128xi32>
    %69 = vector.extract_strided_slice %55 {offsets = [2, 0], sizes = [10, 128], strides = [1, 1]} : vector<12x128xi32> to vector<10x128xi32>
    %70 = arith.cmpi ne, %56, %69 : vector<10x128xi32>
    %71 = arith.ori %68, %70 : vector<10x128xi1>
    %72 = arith.ori %71, %61 : vector<10x128xi1>
    %73 = arith.ori %72, %66 : vector<10x128xi1>
    %74 = arith.andi %73, %40 : vector<10x128xi1>
    %75 = arith.extui %74 : vector<10x128xi1> to vector<10x128xi32>
    %76 = arith.sitofp %75 : vector<10x128xi32> to vector<10x128xf32>
    %c1_i32_21 = arith.constant 1 : i32
    %77 = vector.broadcast %c1_i32_21 : i32 to vector<10x128xi32>
    %78 = arith.cmpi sge, %35, %77 : vector<10x128xi32>
    %c1_i32_22 = arith.constant 1 : i32
    %79 = tpu.dynamic_rotate %76 by %c1_i32_22 dim 1 : vector<10x128xf32>, i32 -> vector<10x128xf32>
    %cst_23 = arith.constant 0.000000e+00 : f32
    %80 = vector.broadcast %cst_23 : f32 to vector<10x128xf32>
    %81 = arith.select %78, %79, %80 : vector<10x128xi1>, vector<10x128xf32>
    %c126_i32_24 = arith.constant 126 : i32
    %82 = vector.broadcast %c126_i32_24 : i32 to vector<10x128xi32>
    %83 = arith.cmpi sle, %35, %82 : vector<10x128xi32>
    %c127_i32_25 = arith.constant 127 : i32
    %84 = tpu.dynamic_rotate %76 by %c127_i32_25 dim 1 : vector<10x128xf32>, i32 -> vector<10x128xf32>
    %cst_26 = arith.constant 0.000000e+00 : f32
    %85 = vector.broadcast %cst_26 : f32 to vector<10x128xf32>
    %86 = arith.select %83, %84, %85 : vector<10x128xi1>, vector<10x128xf32>
    %87 = vector.extract_strided_slice %47 {offsets = [0, 0], sizes = [8, 128], strides = [1, 1]} : vector<10x128xi32> to vector<8x128xi32>
    %88 = vector.extract_strided_slice %81 {offsets = [0, 0], sizes = [8, 128], strides = [1, 1]} : vector<10x128xf32> to vector<8x128xf32>
    %89 = vector.extract_strided_slice %42 {offsets = [0, 0], sizes = [8, 128], strides = [1, 1]} : vector<10x128xi32> to vector<8x128xi32>
    %90 = vector.extract_strided_slice %76 {offsets = [0, 0], sizes = [8, 128], strides = [1, 1]} : vector<10x128xf32> to vector<8x128xf32>
    %91 = vector.extract_strided_slice %52 {offsets = [0, 0], sizes = [8, 128], strides = [1, 1]} : vector<10x128xi32> to vector<8x128xi32>
    %92 = vector.extract_strided_slice %86 {offsets = [0, 0], sizes = [8, 128], strides = [1, 1]} : vector<10x128xf32> to vector<8x128xf32>
    %93 = vector.extract_strided_slice %47 {offsets = [1, 0], sizes = [8, 128], strides = [1, 1]} : vector<10x128xi32> to vector<8x128xi32>
    %94 = vector.extract_strided_slice %81 {offsets = [1, 0], sizes = [8, 128], strides = [1, 1]} : vector<10x128xf32> to vector<8x128xf32>
    %95 = vector.extract_strided_slice %42 {offsets = [1, 0], sizes = [8, 128], strides = [1, 1]} : vector<10x128xi32> to vector<8x128xi32>
    %96 = vector.extract_strided_slice %76 {offsets = [1, 0], sizes = [8, 128], strides = [1, 1]} : vector<10x128xf32> to vector<8x128xf32>
    %97 = vector.extract_strided_slice %52 {offsets = [1, 0], sizes = [8, 128], strides = [1, 1]} : vector<10x128xi32> to vector<8x128xi32>
    %98 = vector.extract_strided_slice %86 {offsets = [1, 0], sizes = [8, 128], strides = [1, 1]} : vector<10x128xf32> to vector<8x128xf32>
    %99 = vector.extract_strided_slice %47 {offsets = [2, 0], sizes = [8, 128], strides = [1, 1]} : vector<10x128xi32> to vector<8x128xi32>
    %100 = vector.extract_strided_slice %81 {offsets = [2, 0], sizes = [8, 128], strides = [1, 1]} : vector<10x128xf32> to vector<8x128xf32>
    %101 = vector.extract_strided_slice %42 {offsets = [2, 0], sizes = [8, 128], strides = [1, 1]} : vector<10x128xi32> to vector<8x128xi32>
    %102 = vector.extract_strided_slice %76 {offsets = [2, 0], sizes = [8, 128], strides = [1, 1]} : vector<10x128xf32> to vector<8x128xf32>
    %103 = vector.extract_strided_slice %52 {offsets = [2, 0], sizes = [8, 128], strides = [1, 1]} : vector<10x128xi32> to vector<8x128xi32>
    %104 = vector.extract_strided_slice %86 {offsets = [2, 0], sizes = [8, 128], strides = [1, 1]} : vector<10x128xf32> to vector<8x128xf32>
    %c0_27 = arith.constant 0 : index
    %105 = memref.load %arg5[%c0_27] : memref<3xf32, #tpu.memory_space<smem>>
    %106 = vector.broadcast %105 : f32 to vector<8x128xf32>
    %c1_28 = arith.constant 1 : index
    %107 = memref.load %arg5[%c1_28] : memref<3xf32, #tpu.memory_space<smem>>
    %108 = vector.broadcast %107 : f32 to vector<8x128xf32>
    %c2_29 = arith.constant 2 : index
    %109 = memref.load %arg5[%c2_29] : memref<3xf32, #tpu.memory_space<smem>>
    %110 = vector.broadcast %109 : f32 to vector<8x128xf32>
    %c36 = arith.constant 36 : index
    %111 = memref.load %arg4[%c36] : memref<135xf32, #tpu.memory_space<smem>>
    %112 = vector.broadcast %111 : f32 to vector<8x128xf32>
    %113 = arith.mulf %112, %88 : vector<8x128xf32>
    %114 = arith.addf %106, %113 : vector<8x128xf32>
    %c81 = arith.constant 81 : index
    %115 = memref.load %arg4[%c81] : memref<135xf32, #tpu.memory_space<smem>>
    %116 = vector.broadcast %115 : f32 to vector<8x128xf32>
    %117 = arith.mulf %116, %88 : vector<8x128xf32>
    %118 = arith.addf %108, %117 : vector<8x128xf32>
    %c126 = arith.constant 126 : index
    %119 = memref.load %arg4[%c126] : memref<135xf32, #tpu.memory_space<smem>>
    %120 = vector.broadcast %119 : f32 to vector<8x128xf32>
    %121 = arith.mulf %120, %88 : vector<8x128xf32>
    %122 = arith.addf %110, %121 : vector<8x128xf32>
    %c37 = arith.constant 37 : index
    %123 = memref.load %arg4[%c37] : memref<135xf32, #tpu.memory_space<smem>>
    %124 = vector.broadcast %123 : f32 to vector<8x128xf32>
    %125 = arith.mulf %124, %90 : vector<8x128xf32>
    %126 = arith.addf %114, %125 : vector<8x128xf32>
    %c82 = arith.constant 82 : index
    %127 = memref.load %arg4[%c82] : memref<135xf32, #tpu.memory_space<smem>>
    %128 = vector.broadcast %127 : f32 to vector<8x128xf32>
    %129 = arith.mulf %128, %90 : vector<8x128xf32>
    %130 = arith.addf %118, %129 : vector<8x128xf32>
    %c127 = arith.constant 127 : index
    %131 = memref.load %arg4[%c127] : memref<135xf32, #tpu.memory_space<smem>>
    %132 = vector.broadcast %131 : f32 to vector<8x128xf32>
    %133 = arith.mulf %132, %90 : vector<8x128xf32>
    %134 = arith.addf %122, %133 : vector<8x128xf32>
    %c38 = arith.constant 38 : index
    %135 = memref.load %arg4[%c38] : memref<135xf32, #tpu.memory_space<smem>>
    %136 = vector.broadcast %135 : f32 to vector<8x128xf32>
    %137 = arith.mulf %136, %92 : vector<8x128xf32>
    %138 = arith.addf %126, %137 : vector<8x128xf32>
    %c83 = arith.constant 83 : index
    %139 = memref.load %arg4[%c83] : memref<135xf32, #tpu.memory_space<smem>>
    %140 = vector.broadcast %139 : f32 to vector<8x128xf32>
    %141 = arith.mulf %140, %92 : vector<8x128xf32>
    %142 = arith.addf %130, %141 : vector<8x128xf32>
    %c128 = arith.constant 128 : index
    %143 = memref.load %arg4[%c128] : memref<135xf32, #tpu.memory_space<smem>>
    %144 = vector.broadcast %143 : f32 to vector<8x128xf32>
    %145 = arith.mulf %144, %92 : vector<8x128xf32>
    %146 = arith.addf %134, %145 : vector<8x128xf32>
    %c39 = arith.constant 39 : index
    %147 = memref.load %arg4[%c39] : memref<135xf32, #tpu.memory_space<smem>>
    %148 = vector.broadcast %147 : f32 to vector<8x128xf32>
    %149 = arith.mulf %148, %94 : vector<8x128xf32>
    %150 = arith.addf %138, %149 : vector<8x128xf32>
    %c84 = arith.constant 84 : index
    %151 = memref.load %arg4[%c84] : memref<135xf32, #tpu.memory_space<smem>>
    %152 = vector.broadcast %151 : f32 to vector<8x128xf32>
    %153 = arith.mulf %152, %94 : vector<8x128xf32>
    %154 = arith.addf %142, %153 : vector<8x128xf32>
    %c129 = arith.constant 129 : index
    %155 = memref.load %arg4[%c129] : memref<135xf32, #tpu.memory_space<smem>>
    %156 = vector.broadcast %155 : f32 to vector<8x128xf32>
    %157 = arith.mulf %156, %94 : vector<8x128xf32>
    %158 = arith.addf %146, %157 : vector<8x128xf32>
    %c40 = arith.constant 40 : index
    %159 = memref.load %arg4[%c40] : memref<135xf32, #tpu.memory_space<smem>>
    %160 = vector.broadcast %159 : f32 to vector<8x128xf32>
    %161 = arith.mulf %160, %96 : vector<8x128xf32>
    %162 = arith.addf %150, %161 : vector<8x128xf32>
    %c85 = arith.constant 85 : index
    %163 = memref.load %arg4[%c85] : memref<135xf32, #tpu.memory_space<smem>>
    %164 = vector.broadcast %163 : f32 to vector<8x128xf32>
    %165 = arith.mulf %164, %96 : vector<8x128xf32>
    %166 = arith.addf %154, %165 : vector<8x128xf32>
    %c130 = arith.constant 130 : index
    %167 = memref.load %arg4[%c130] : memref<135xf32, #tpu.memory_space<smem>>
    %168 = vector.broadcast %167 : f32 to vector<8x128xf32>
    %169 = arith.mulf %168, %96 : vector<8x128xf32>
    %170 = arith.addf %158, %169 : vector<8x128xf32>
    %c41 = arith.constant 41 : index
    %171 = memref.load %arg4[%c41] : memref<135xf32, #tpu.memory_space<smem>>
    %172 = vector.broadcast %171 : f32 to vector<8x128xf32>
    %173 = arith.mulf %172, %98 : vector<8x128xf32>
    %174 = arith.addf %162, %173 : vector<8x128xf32>
    %c86 = arith.constant 86 : index
    %175 = memref.load %arg4[%c86] : memref<135xf32, #tpu.memory_space<smem>>
    %176 = vector.broadcast %175 : f32 to vector<8x128xf32>
    %177 = arith.mulf %176, %98 : vector<8x128xf32>
    %178 = arith.addf %166, %177 : vector<8x128xf32>
    %c131 = arith.constant 131 : index
    %179 = memref.load %arg4[%c131] : memref<135xf32, #tpu.memory_space<smem>>
    %180 = vector.broadcast %179 : f32 to vector<8x128xf32>
    %181 = arith.mulf %180, %98 : vector<8x128xf32>
    %182 = arith.addf %170, %181 : vector<8x128xf32>
    %c42 = arith.constant 42 : index
    %183 = memref.load %arg4[%c42] : memref<135xf32, #tpu.memory_space<smem>>
    %184 = vector.broadcast %183 : f32 to vector<8x128xf32>
    %185 = arith.mulf %184, %100 : vector<8x128xf32>
    %186 = arith.addf %174, %185 : vector<8x128xf32>
    %c87 = arith.constant 87 : index
    %187 = memref.load %arg4[%c87] : memref<135xf32, #tpu.memory_space<smem>>
    %188 = vector.broadcast %187 : f32 to vector<8x128xf32>
    %189 = arith.mulf %188, %100 : vector<8x128xf32>
    %190 = arith.addf %178, %189 : vector<8x128xf32>
    %c132 = arith.constant 132 : index
    %191 = memref.load %arg4[%c132] : memref<135xf32, #tpu.memory_space<smem>>
    %192 = vector.broadcast %191 : f32 to vector<8x128xf32>
    %193 = arith.mulf %192, %100 : vector<8x128xf32>
    %194 = arith.addf %182, %193 : vector<8x128xf32>
    %c43 = arith.constant 43 : index
    %195 = memref.load %arg4[%c43] : memref<135xf32, #tpu.memory_space<smem>>
    %196 = vector.broadcast %195 : f32 to vector<8x128xf32>
    %197 = arith.mulf %196, %102 : vector<8x128xf32>
    %198 = arith.addf %186, %197 : vector<8x128xf32>
    %c88 = arith.constant 88 : index
    %199 = memref.load %arg4[%c88] : memref<135xf32, #tpu.memory_space<smem>>
    %200 = vector.broadcast %199 : f32 to vector<8x128xf32>
    %201 = arith.mulf %200, %102 : vector<8x128xf32>
    %202 = arith.addf %190, %201 : vector<8x128xf32>
    %c133 = arith.constant 133 : index
    %203 = memref.load %arg4[%c133] : memref<135xf32, #tpu.memory_space<smem>>
    %204 = vector.broadcast %203 : f32 to vector<8x128xf32>
    %205 = arith.mulf %204, %102 : vector<8x128xf32>
    %206 = arith.addf %194, %205 : vector<8x128xf32>
    %c44 = arith.constant 44 : index
    %207 = memref.load %arg4[%c44] : memref<135xf32, #tpu.memory_space<smem>>
    %208 = vector.broadcast %207 : f32 to vector<8x128xf32>
    %209 = arith.mulf %208, %104 : vector<8x128xf32>
    %210 = arith.addf %198, %209 : vector<8x128xf32>
    %c89 = arith.constant 89 : index
    %211 = memref.load %arg4[%c89] : memref<135xf32, #tpu.memory_space<smem>>
    %212 = vector.broadcast %211 : f32 to vector<8x128xf32>
    %213 = arith.mulf %212, %104 : vector<8x128xf32>
    %214 = arith.addf %202, %213 : vector<8x128xf32>
    %c134 = arith.constant 134 : index
    %215 = memref.load %arg4[%c134] : memref<135xf32, #tpu.memory_space<smem>>
    %216 = vector.broadcast %215 : f32 to vector<8x128xf32>
    %217 = arith.mulf %216, %104 : vector<8x128xf32>
    %218 = arith.addf %206, %217 : vector<8x128xf32>
    %c0_i32_30 = arith.constant 0 : i32
    %c4_i32_31 = arith.constant 4 : i32
    %219 = arith.addi %c0_i32_30, %c4_i32_31 : i32
    %c1_i32_32 = arith.constant 1 : i32
    %220:3 = scf.for %arg7 = %c0_i32_30 to %219 step %c1_i32_32 iter_args(%arg8 = %210, %arg9 = %214, %arg10 = %218) -> (vector<8x128xf32>, vector<8x128xf32>, vector<8x128xf32>)  : i32 {
      %233 = vector.broadcast %arg7 : i32 to vector<8x128xi32>
      %234 = arith.cmpi eq, %87, %233 : vector<8x128xi32>
      %c9_i32 = arith.constant 9 : i32
      %235 = arith.muli %arg7, %c9_i32 : i32
      %c0_i32_46 = arith.constant 0 : i32
      %236 = arith.addi %c0_i32_46, %235 : i32
      %c0_i32_47 = arith.constant 0 : i32
      %237 = arith.addi %236, %c0_i32_47 : i32
      %238 = arith.index_cast %237 : i32 to index
      %239 = memref.load %arg4[%238] : memref<135xf32, #tpu.memory_space<smem>>
      %cst_48 = arith.constant 0.000000e+00 : f32
      %240 = vector.broadcast %239 : f32 to vector<8x128xf32>
      %241 = vector.broadcast %cst_48 : f32 to vector<8x128xf32>
      %242 = arith.select %234, %240, %241 : vector<8x128xi1>, vector<8x128xf32>
      %243 = arith.addf %arg8, %242 : vector<8x128xf32>
      %c9_i32_49 = arith.constant 9 : i32
      %244 = arith.muli %arg7, %c9_i32_49 : i32
      %c45_i32 = arith.constant 45 : i32
      %245 = arith.addi %c45_i32, %244 : i32
      %c0_i32_50 = arith.constant 0 : i32
      %246 = arith.addi %245, %c0_i32_50 : i32
      %247 = arith.index_cast %246 : i32 to index
      %248 = memref.load %arg4[%247] : memref<135xf32, #tpu.memory_space<smem>>
      %cst_51 = arith.constant 0.000000e+00 : f32
      %249 = vector.broadcast %248 : f32 to vector<8x128xf32>
      %250 = vector.broadcast %cst_51 : f32 to vector<8x128xf32>
      %251 = arith.select %234, %249, %250 : vector<8x128xi1>, vector<8x128xf32>
      %252 = arith.addf %arg9, %251 : vector<8x128xf32>
      %c9_i32_52 = arith.constant 9 : i32
      %253 = arith.muli %arg7, %c9_i32_52 : i32
      %c90_i32 = arith.constant 90 : i32
      %254 = arith.addi %c90_i32, %253 : i32
      %c0_i32_53 = arith.constant 0 : i32
      %255 = arith.addi %254, %c0_i32_53 : i32
      %256 = arith.index_cast %255 : i32 to index
      %257 = memref.load %arg4[%256] : memref<135xf32, #tpu.memory_space<smem>>
      %cst_54 = arith.constant 0.000000e+00 : f32
      %258 = vector.broadcast %257 : f32 to vector<8x128xf32>
      %259 = vector.broadcast %cst_54 : f32 to vector<8x128xf32>
      %260 = arith.select %234, %258, %259 : vector<8x128xi1>, vector<8x128xf32>
      %261 = arith.addf %arg10, %260 : vector<8x128xf32>
      %262 = vector.broadcast %arg7 : i32 to vector<8x128xi32>
      %263 = arith.cmpi eq, %89, %262 : vector<8x128xi32>
      %c9_i32_55 = arith.constant 9 : i32
      %264 = arith.muli %arg7, %c9_i32_55 : i32
      %c0_i32_56 = arith.constant 0 : i32
      %265 = arith.addi %c0_i32_56, %264 : i32
      %c1_i32_57 = arith.constant 1 : i32
      %266 = arith.addi %265, %c1_i32_57 : i32
      %267 = arith.index_cast %266 : i32 to index
      %268 = memref.load %arg4[%267] : memref<135xf32, #tpu.memory_space<smem>>
      %cst_58 = arith.constant 0.000000e+00 : f32
      %269 = vector.broadcast %268 : f32 to vector<8x128xf32>
      %270 = vector.broadcast %cst_58 : f32 to vector<8x128xf32>
      %271 = arith.select %263, %269, %270 : vector<8x128xi1>, vector<8x128xf32>
      %272 = arith.addf %243, %271 : vector<8x128xf32>
      %c9_i32_59 = arith.constant 9 : i32
      %273 = arith.muli %arg7, %c9_i32_59 : i32
      %c45_i32_60 = arith.constant 45 : i32
      %274 = arith.addi %c45_i32_60, %273 : i32
      %c1_i32_61 = arith.constant 1 : i32
      %275 = arith.addi %274, %c1_i32_61 : i32
      %276 = arith.index_cast %275 : i32 to index
      %277 = memref.load %arg4[%276] : memref<135xf32, #tpu.memory_space<smem>>
      %cst_62 = arith.constant 0.000000e+00 : f32
      %278 = vector.broadcast %277 : f32 to vector<8x128xf32>
      %279 = vector.broadcast %cst_62 : f32 to vector<8x128xf32>
      %280 = arith.select %263, %278, %279 : vector<8x128xi1>, vector<8x128xf32>
      %281 = arith.addf %252, %280 : vector<8x128xf32>
      %c9_i32_63 = arith.constant 9 : i32
      %282 = arith.muli %arg7, %c9_i32_63 : i32
      %c90_i32_64 = arith.constant 90 : i32
      %283 = arith.addi %c90_i32_64, %282 : i32
      %c1_i32_65 = arith.constant 1 : i32
      %284 = arith.addi %283, %c1_i32_65 : i32
      %285 = arith.index_cast %284 : i32 to index
      %286 = memref.load %arg4[%285] : memref<135xf32, #tpu.memory_space<smem>>
      %cst_66 = arith.constant 0.000000e+00 : f32
      %287 = vector.broadcast %286 : f32 to vector<8x128xf32>
      %288 = vector.broadcast %cst_66 : f32 to vector<8x128xf32>
      %289 = arith.select %263, %287, %288 : vector<8x128xi1>, vector<8x128xf32>
      %290 = arith.addf %261, %289 : vector<8x128xf32>
      %291 = vector.broadcast %arg7 : i32 to vector<8x128xi32>
      %292 = arith.cmpi eq, %91, %291 : vector<8x128xi32>
      %c9_i32_67 = arith.constant 9 : i32
      %293 = arith.muli %arg7, %c9_i32_67 : i32
      %c0_i32_68 = arith.constant 0 : i32
      %294 = arith.addi %c0_i32_68, %293 : i32
      %c2_i32 = arith.constant 2 : i32
      %295 = arith.addi %294, %c2_i32 : i32
      %296 = arith.index_cast %295 : i32 to index
      %297 = memref.load %arg4[%296] : memref<135xf32, #tpu.memory_space<smem>>
      %cst_69 = arith.constant 0.000000e+00 : f32
      %298 = vector.broadcast %297 : f32 to vector<8x128xf32>
      %299 = vector.broadcast %cst_69 : f32 to vector<8x128xf32>
      %300 = arith.select %292, %298, %299 : vector<8x128xi1>, vector<8x128xf32>
      %301 = arith.addf %272, %300 : vector<8x128xf32>
      %c9_i32_70 = arith.constant 9 : i32
      %302 = arith.muli %arg7, %c9_i32_70 : i32
      %c45_i32_71 = arith.constant 45 : i32
      %303 = arith.addi %c45_i32_71, %302 : i32
      %c2_i32_72 = arith.constant 2 : i32
      %304 = arith.addi %303, %c2_i32_72 : i32
      %305 = arith.index_cast %304 : i32 to index
      %306 = memref.load %arg4[%305] : memref<135xf32, #tpu.memory_space<smem>>
      %cst_73 = arith.constant 0.000000e+00 : f32
      %307 = vector.broadcast %306 : f32 to vector<8x128xf32>
      %308 = vector.broadcast %cst_73 : f32 to vector<8x128xf32>
      %309 = arith.select %292, %307, %308 : vector<8x128xi1>, vector<8x128xf32>
      %310 = arith.addf %281, %309 : vector<8x128xf32>
      %c9_i32_74 = arith.constant 9 : i32
      %311 = arith.muli %arg7, %c9_i32_74 : i32
      %c90_i32_75 = arith.constant 90 : i32
      %312 = arith.addi %c90_i32_75, %311 : i32
      %c2_i32_76 = arith.constant 2 : i32
      %313 = arith.addi %312, %c2_i32_76 : i32
      %314 = arith.index_cast %313 : i32 to index
      %315 = memref.load %arg4[%314] : memref<135xf32, #tpu.memory_space<smem>>
      %cst_77 = arith.constant 0.000000e+00 : f32
      %316 = vector.broadcast %315 : f32 to vector<8x128xf32>
      %317 = vector.broadcast %cst_77 : f32 to vector<8x128xf32>
      %318 = arith.select %292, %316, %317 : vector<8x128xi1>, vector<8x128xf32>
      %319 = arith.addf %290, %318 : vector<8x128xf32>
      %320 = vector.broadcast %arg7 : i32 to vector<8x128xi32>
      %321 = arith.cmpi eq, %93, %320 : vector<8x128xi32>
      %c9_i32_78 = arith.constant 9 : i32
      %322 = arith.muli %arg7, %c9_i32_78 : i32
      %c0_i32_79 = arith.constant 0 : i32
      %323 = arith.addi %c0_i32_79, %322 : i32
      %c3_i32_80 = arith.constant 3 : i32
      %324 = arith.addi %323, %c3_i32_80 : i32
      %325 = arith.index_cast %324 : i32 to index
      %326 = memref.load %arg4[%325] : memref<135xf32, #tpu.memory_space<smem>>
      %cst_81 = arith.constant 0.000000e+00 : f32
      %327 = vector.broadcast %326 : f32 to vector<8x128xf32>
      %328 = vector.broadcast %cst_81 : f32 to vector<8x128xf32>
      %329 = arith.select %321, %327, %328 : vector<8x128xi1>, vector<8x128xf32>
      %330 = arith.addf %301, %329 : vector<8x128xf32>
      %c9_i32_82 = arith.constant 9 : i32
      %331 = arith.muli %arg7, %c9_i32_82 : i32
      %c45_i32_83 = arith.constant 45 : i32
      %332 = arith.addi %c45_i32_83, %331 : i32
      %c3_i32_84 = arith.constant 3 : i32
      %333 = arith.addi %332, %c3_i32_84 : i32
      %334 = arith.index_cast %333 : i32 to index
      %335 = memref.load %arg4[%334] : memref<135xf32, #tpu.memory_space<smem>>
      %cst_85 = arith.constant 0.000000e+00 : f32
      %336 = vector.broadcast %335 : f32 to vector<8x128xf32>
      %337 = vector.broadcast %cst_85 : f32 to vector<8x128xf32>
      %338 = arith.select %321, %336, %337 : vector<8x128xi1>, vector<8x128xf32>
      %339 = arith.addf %310, %338 : vector<8x128xf32>
      %c9_i32_86 = arith.constant 9 : i32
      %340 = arith.muli %arg7, %c9_i32_86 : i32
      %c90_i32_87 = arith.constant 90 : i32
      %341 = arith.addi %c90_i32_87, %340 : i32
      %c3_i32_88 = arith.constant 3 : i32
      %342 = arith.addi %341, %c3_i32_88 : i32
      %343 = arith.index_cast %342 : i32 to index
      %344 = memref.load %arg4[%343] : memref<135xf32, #tpu.memory_space<smem>>
      %cst_89 = arith.constant 0.000000e+00 : f32
      %345 = vector.broadcast %344 : f32 to vector<8x128xf32>
      %346 = vector.broadcast %cst_89 : f32 to vector<8x128xf32>
      %347 = arith.select %321, %345, %346 : vector<8x128xi1>, vector<8x128xf32>
      %348 = arith.addf %319, %347 : vector<8x128xf32>
      %349 = vector.broadcast %arg7 : i32 to vector<8x128xi32>
      %350 = arith.cmpi eq, %95, %349 : vector<8x128xi32>
      %c9_i32_90 = arith.constant 9 : i32
      %351 = arith.muli %arg7, %c9_i32_90 : i32
      %c0_i32_91 = arith.constant 0 : i32
      %352 = arith.addi %c0_i32_91, %351 : i32
      %c4_i32_92 = arith.constant 4 : i32
      %353 = arith.addi %352, %c4_i32_92 : i32
      %354 = arith.index_cast %353 : i32 to index
      %355 = memref.load %arg4[%354] : memref<135xf32, #tpu.memory_space<smem>>
      %cst_93 = arith.constant 0.000000e+00 : f32
      %356 = vector.broadcast %355 : f32 to vector<8x128xf32>
      %357 = vector.broadcast %cst_93 : f32 to vector<8x128xf32>
      %358 = arith.select %350, %356, %357 : vector<8x128xi1>, vector<8x128xf32>
      %359 = arith.addf %330, %358 : vector<8x128xf32>
      %c9_i32_94 = arith.constant 9 : i32
      %360 = arith.muli %arg7, %c9_i32_94 : i32
      %c45_i32_95 = arith.constant 45 : i32
      %361 = arith.addi %c45_i32_95, %360 : i32
      %c4_i32_96 = arith.constant 4 : i32
      %362 = arith.addi %361, %c4_i32_96 : i32
      %363 = arith.index_cast %362 : i32 to index
      %364 = memref.load %arg4[%363] : memref<135xf32, #tpu.memory_space<smem>>
      %cst_97 = arith.constant 0.000000e+00 : f32
      %365 = vector.broadcast %364 : f32 to vector<8x128xf32>
      %366 = vector.broadcast %cst_97 : f32 to vector<8x128xf32>
      %367 = arith.select %350, %365, %366 : vector<8x128xi1>, vector<8x128xf32>
      %368 = arith.addf %339, %367 : vector<8x128xf32>
      %c9_i32_98 = arith.constant 9 : i32
      %369 = arith.muli %arg7, %c9_i32_98 : i32
      %c90_i32_99 = arith.constant 90 : i32
      %370 = arith.addi %c90_i32_99, %369 : i32
      %c4_i32_100 = arith.constant 4 : i32
      %371 = arith.addi %370, %c4_i32_100 : i32
      %372 = arith.index_cast %371 : i32 to index
      %373 = memref.load %arg4[%372] : memref<135xf32, #tpu.memory_space<smem>>
      %cst_101 = arith.constant 0.000000e+00 : f32
      %374 = vector.broadcast %373 : f32 to vector<8x128xf32>
      %375 = vector.broadcast %cst_101 : f32 to vector<8x128xf32>
      %376 = arith.select %350, %374, %375 : vector<8x128xi1>, vector<8x128xf32>
      %377 = arith.addf %348, %376 : vector<8x128xf32>
      %378 = vector.broadcast %arg7 : i32 to vector<8x128xi32>
      %379 = arith.cmpi eq, %97, %378 : vector<8x128xi32>
      %c9_i32_102 = arith.constant 9 : i32
      %380 = arith.muli %arg7, %c9_i32_102 : i32
      %c0_i32_103 = arith.constant 0 : i32
      %381 = arith.addi %c0_i32_103, %380 : i32
      %c5_i32 = arith.constant 5 : i32
      %382 = arith.addi %381, %c5_i32 : i32
      %383 = arith.index_cast %382 : i32 to index
      %384 = memref.load %arg4[%383] : memref<135xf32, #tpu.memory_space<smem>>
      %cst_104 = arith.constant 0.000000e+00 : f32
      %385 = vector.broadcast %384 : f32 to vector<8x128xf32>
      %386 = vector.broadcast %cst_104 : f32 to vector<8x128xf32>
      %387 = arith.select %379, %385, %386 : vector<8x128xi1>, vector<8x128xf32>
      %388 = arith.addf %359, %387 : vector<8x128xf32>
      %c9_i32_105 = arith.constant 9 : i32
      %389 = arith.muli %arg7, %c9_i32_105 : i32
      %c45_i32_106 = arith.constant 45 : i32
      %390 = arith.addi %c45_i32_106, %389 : i32
      %c5_i32_107 = arith.constant 5 : i32
      %391 = arith.addi %390, %c5_i32_107 : i32
      %392 = arith.index_cast %391 : i32 to index
      %393 = memref.load %arg4[%392] : memref<135xf32, #tpu.memory_space<smem>>
      %cst_108 = arith.constant 0.000000e+00 : f32
      %394 = vector.broadcast %393 : f32 to vector<8x128xf32>
      %395 = vector.broadcast %cst_108 : f32 to vector<8x128xf32>
      %396 = arith.select %379, %394, %395 : vector<8x128xi1>, vector<8x128xf32>
      %397 = arith.addf %368, %396 : vector<8x128xf32>
      %c9_i32_109 = arith.constant 9 : i32
      %398 = arith.muli %arg7, %c9_i32_109 : i32
      %c90_i32_110 = arith.constant 90 : i32
      %399 = arith.addi %c90_i32_110, %398 : i32
      %c5_i32_111 = arith.constant 5 : i32
      %400 = arith.addi %399, %c5_i32_111 : i32
      %401 = arith.index_cast %400 : i32 to index
      %402 = memref.load %arg4[%401] : memref<135xf32, #tpu.memory_space<smem>>
      %cst_112 = arith.constant 0.000000e+00 : f32
      %403 = vector.broadcast %402 : f32 to vector<8x128xf32>
      %404 = vector.broadcast %cst_112 : f32 to vector<8x128xf32>
      %405 = arith.select %379, %403, %404 : vector<8x128xi1>, vector<8x128xf32>
      %406 = arith.addf %377, %405 : vector<8x128xf32>
      %407 = vector.broadcast %arg7 : i32 to vector<8x128xi32>
      %408 = arith.cmpi eq, %99, %407 : vector<8x128xi32>
      %c9_i32_113 = arith.constant 9 : i32
      %409 = arith.muli %arg7, %c9_i32_113 : i32
      %c0_i32_114 = arith.constant 0 : i32
      %410 = arith.addi %c0_i32_114, %409 : i32
      %c6_i32 = arith.constant 6 : i32
      %411 = arith.addi %410, %c6_i32 : i32
      %412 = arith.index_cast %411 : i32 to index
      %413 = memref.load %arg4[%412] : memref<135xf32, #tpu.memory_space<smem>>
      %cst_115 = arith.constant 0.000000e+00 : f32
      %414 = vector.broadcast %413 : f32 to vector<8x128xf32>
      %415 = vector.broadcast %cst_115 : f32 to vector<8x128xf32>
      %416 = arith.select %408, %414, %415 : vector<8x128xi1>, vector<8x128xf32>
      %417 = arith.addf %388, %416 : vector<8x128xf32>
      %c9_i32_116 = arith.constant 9 : i32
      %418 = arith.muli %arg7, %c9_i32_116 : i32
      %c45_i32_117 = arith.constant 45 : i32
      %419 = arith.addi %c45_i32_117, %418 : i32
      %c6_i32_118 = arith.constant 6 : i32
      %420 = arith.addi %419, %c6_i32_118 : i32
      %421 = arith.index_cast %420 : i32 to index
      %422 = memref.load %arg4[%421] : memref<135xf32, #tpu.memory_space<smem>>
      %cst_119 = arith.constant 0.000000e+00 : f32
      %423 = vector.broadcast %422 : f32 to vector<8x128xf32>
      %424 = vector.broadcast %cst_119 : f32 to vector<8x128xf32>
      %425 = arith.select %408, %423, %424 : vector<8x128xi1>, vector<8x128xf32>
      %426 = arith.addf %397, %425 : vector<8x128xf32>
      %c9_i32_120 = arith.constant 9 : i32
      %427 = arith.muli %arg7, %c9_i32_120 : i32
      %c90_i32_121 = arith.constant 90 : i32
      %428 = arith.addi %c90_i32_121, %427 : i32
      %c6_i32_122 = arith.constant 6 : i32
      %429 = arith.addi %428, %c6_i32_122 : i32
      %430 = arith.index_cast %429 : i32 to index
      %431 = memref.load %arg4[%430] : memref<135xf32, #tpu.memory_space<smem>>
      %cst_123 = arith.constant 0.000000e+00 : f32
      %432 = vector.broadcast %431 : f32 to vector<8x128xf32>
      %433 = vector.broadcast %cst_123 : f32 to vector<8x128xf32>
      %434 = arith.select %408, %432, %433 : vector<8x128xi1>, vector<8x128xf32>
      %435 = arith.addf %406, %434 : vector<8x128xf32>
      %436 = vector.broadcast %arg7 : i32 to vector<8x128xi32>
      %437 = arith.cmpi eq, %101, %436 : vector<8x128xi32>
      %c9_i32_124 = arith.constant 9 : i32
      %438 = arith.muli %arg7, %c9_i32_124 : i32
      %c0_i32_125 = arith.constant 0 : i32
      %439 = arith.addi %c0_i32_125, %438 : i32
      %c7_i32 = arith.constant 7 : i32
      %440 = arith.addi %439, %c7_i32 : i32
      %441 = arith.index_cast %440 : i32 to index
      %442 = memref.load %arg4[%441] : memref<135xf32, #tpu.memory_space<smem>>
      %cst_126 = arith.constant 0.000000e+00 : f32
      %443 = vector.broadcast %442 : f32 to vector<8x128xf32>
      %444 = vector.broadcast %cst_126 : f32 to vector<8x128xf32>
      %445 = arith.select %437, %443, %444 : vector<8x128xi1>, vector<8x128xf32>
      %446 = arith.addf %417, %445 : vector<8x128xf32>
      %c9_i32_127 = arith.constant 9 : i32
      %447 = arith.muli %arg7, %c9_i32_127 : i32
      %c45_i32_128 = arith.constant 45 : i32
      %448 = arith.addi %c45_i32_128, %447 : i32
      %c7_i32_129 = arith.constant 7 : i32
      %449 = arith.addi %448, %c7_i32_129 : i32
      %450 = arith.index_cast %449 : i32 to index
      %451 = memref.load %arg4[%450] : memref<135xf32, #tpu.memory_space<smem>>
      %cst_130 = arith.constant 0.000000e+00 : f32
      %452 = vector.broadcast %451 : f32 to vector<8x128xf32>
      %453 = vector.broadcast %cst_130 : f32 to vector<8x128xf32>
      %454 = arith.select %437, %452, %453 : vector<8x128xi1>, vector<8x128xf32>
      %455 = arith.addf %426, %454 : vector<8x128xf32>
      %c9_i32_131 = arith.constant 9 : i32
      %456 = arith.muli %arg7, %c9_i32_131 : i32
      %c90_i32_132 = arith.constant 90 : i32
      %457 = arith.addi %c90_i32_132, %456 : i32
      %c7_i32_133 = arith.constant 7 : i32
      %458 = arith.addi %457, %c7_i32_133 : i32
      %459 = arith.index_cast %458 : i32 to index
      %460 = memref.load %arg4[%459] : memref<135xf32, #tpu.memory_space<smem>>
      %cst_134 = arith.constant 0.000000e+00 : f32
      %461 = vector.broadcast %460 : f32 to vector<8x128xf32>
      %462 = vector.broadcast %cst_134 : f32 to vector<8x128xf32>
      %463 = arith.select %437, %461, %462 : vector<8x128xi1>, vector<8x128xf32>
      %464 = arith.addf %435, %463 : vector<8x128xf32>
      %465 = vector.broadcast %arg7 : i32 to vector<8x128xi32>
      %466 = arith.cmpi eq, %103, %465 : vector<8x128xi32>
      %c9_i32_135 = arith.constant 9 : i32
      %467 = arith.muli %arg7, %c9_i32_135 : i32
      %c0_i32_136 = arith.constant 0 : i32
      %468 = arith.addi %c0_i32_136, %467 : i32
      %c8_i32_137 = arith.constant 8 : i32
      %469 = arith.addi %468, %c8_i32_137 : i32
      %470 = arith.index_cast %469 : i32 to index
      %471 = memref.load %arg4[%470] : memref<135xf32, #tpu.memory_space<smem>>
      %cst_138 = arith.constant 0.000000e+00 : f32
      %472 = vector.broadcast %471 : f32 to vector<8x128xf32>
      %473 = vector.broadcast %cst_138 : f32 to vector<8x128xf32>
      %474 = arith.select %466, %472, %473 : vector<8x128xi1>, vector<8x128xf32>
      %475 = arith.addf %446, %474 : vector<8x128xf32>
      %c9_i32_139 = arith.constant 9 : i32
      %476 = arith.muli %arg7, %c9_i32_139 : i32
      %c45_i32_140 = arith.constant 45 : i32
      %477 = arith.addi %c45_i32_140, %476 : i32
      %c8_i32_141 = arith.constant 8 : i32
      %478 = arith.addi %477, %c8_i32_141 : i32
      %479 = arith.index_cast %478 : i32 to index
      %480 = memref.load %arg4[%479] : memref<135xf32, #tpu.memory_space<smem>>
      %cst_142 = arith.constant 0.000000e+00 : f32
      %481 = vector.broadcast %480 : f32 to vector<8x128xf32>
      %482 = vector.broadcast %cst_142 : f32 to vector<8x128xf32>
      %483 = arith.select %466, %481, %482 : vector<8x128xi1>, vector<8x128xf32>
      %484 = arith.addf %455, %483 : vector<8x128xf32>
      %c9_i32_143 = arith.constant 9 : i32
      %485 = arith.muli %arg7, %c9_i32_143 : i32
      %c90_i32_144 = arith.constant 90 : i32
      %486 = arith.addi %c90_i32_144, %485 : i32
      %c8_i32_145 = arith.constant 8 : i32
      %487 = arith.addi %486, %c8_i32_145 : i32
      %488 = arith.index_cast %487 : i32 to index
      %489 = memref.load %arg4[%488] : memref<135xf32, #tpu.memory_space<smem>>
      %cst_146 = arith.constant 0.000000e+00 : f32
      %490 = vector.broadcast %489 : f32 to vector<8x128xf32>
      %491 = vector.broadcast %cst_146 : f32 to vector<8x128xf32>
      %492 = arith.select %466, %490, %491 : vector<8x128xi1>, vector<8x128xf32>
      %493 = arith.addf %464, %492 : vector<8x128xf32>
      scf.yield %475, %484, %493 : vector<8x128xf32>, vector<8x128xf32>, vector<8x128xf32>
    }
    %c4_i32_33 = arith.constant 4 : i32
    %221 = math.tanh %220#0 : vector<8x128xf32>
    %c0_34 = arith.constant 0 : index
    %c0_35 = arith.constant 0 : index
    %c0_36 = arith.constant 0 : index
    %c0_37 = arith.constant 0 : index
    %222 = vector.load %arg6[%c0_34, %c0_35, %c0_36, %c0_37] : memref<1x3x8x128xf32, #tpu.memory_space<vmem>>, vector<1x1x8x128xf32>
    %223 = vector.shape_cast %222 : vector<1x1x8x128xf32> to vector<8x128xf32>
    %224 = vector.shape_cast %221 : vector<8x128xf32> to vector<1x1x8x128xf32>
    tpu.vector_store %arg6[%c0_34, %c0_35, %c0_36, %c0_37], %224 {strides = array<i32>} : memref<1x3x8x128xf32, #tpu.memory_space<vmem>>, vector<1x1x8x128xf32>,
    %225 = math.tanh %220#1 : vector<8x128xf32>
    %c0_38 = arith.constant 0 : index
    %c1_39 = arith.constant 1 : index
    %c0_40 = arith.constant 0 : index
    %c0_41 = arith.constant 0 : index
    %226 = vector.load %arg6[%c0_38, %c1_39, %c0_40, %c0_41] : memref<1x3x8x128xf32, #tpu.memory_space<vmem>>, vector<1x1x8x128xf32>
    %227 = vector.shape_cast %226 : vector<1x1x8x128xf32> to vector<8x128xf32>
    %228 = vector.shape_cast %225 : vector<8x128xf32> to vector<1x1x8x128xf32>
    tpu.vector_store %arg6[%c0_38, %c1_39, %c0_40, %c0_41], %228 {strides = array<i32>} : memref<1x3x8x128xf32, #tpu.memory_space<vmem>>, vector<1x1x8x128xf32>,
    %229 = math.tanh %220#2 : vector<8x128xf32>
    %c0_42 = arith.constant 0 : index
    %c2_43 = arith.constant 2 : index
    %c0_44 = arith.constant 0 : index
    %c0_45 = arith.constant 0 : index
    %230 = vector.load %arg6[%c0_42, %c2_43, %c0_44, %c0_45] : memref<1x3x8x128xf32, #tpu.memory_space<vmem>>, vector<1x1x8x128xf32>
    %231 = vector.shape_cast %230 : vector<1x1x8x128xf32> to vector<8x128xf32>
    %232 = vector.shape_cast %229 : vector<8x128xf32> to vector<1x1x8x128xf32>
    tpu.vector_store %arg6[%c0_42, %c2_43, %c0_44, %c0_45], %232 {strides = array<i32>} : memref<1x3x8x128xf32, #tpu.memory_space<vmem>>, vector<1x1x8x128xf32>,
    return
  }
  func.func @transform_0(%arg0: i32, %arg1: i32) -> (i32, i32, i32, i32) {
    %c0_i32 = arith.constant 0 : i32
    %c0_i32_0 = arith.constant 0 : i32
    %c0_i32_1 = arith.constant 0 : i32
    %c0_i32_2 = arith.constant 0 : i32
    return %arg0, %c0_i32, %c0_i32_0, %c0_i32_1 : i32, i32, i32, i32
  }
  func.func @transform_1(%arg0: i32, %arg1: i32) -> (i32, i32, i32, i32) {
    %c0_i32 = arith.constant 0 : i32
    %c0_i32_0 = arith.constant 0 : i32
    %c0_i32_1 = arith.constant 0 : i32
    %c0_i32_2 = arith.constant 0 : i32
    return %arg0, %c0_i32, %c0_i32_0, %c0_i32_1 : i32, i32, i32, i32
  }
  func.func @transform_2(%arg0: i32, %arg1: i32) -> i32 {
    %c0_i32 = arith.constant 0 : i32
    %c0_i32_0 = arith.constant 0 : i32
    return %c0_i32 : i32
  }
  func.func @transform_3(%arg0: i32, %arg1: i32) -> i32 {
    %c0_i32 = arith.constant 0 : i32
    %c0_i32_0 = arith.constant 0 : i32
    return %c0_i32 : i32
  }
  func.func @transform_4(%arg0: i32, %arg1: i32) -> (i32, i32, i32, i32) {
    %c0_i32 = arith.constant 0 : i32
    %c0_i32_0 = arith.constant 0 : i32
    %c0_i32_1 = arith.constant 0 : i32
    return %arg0, %c0_i32, %arg1, %c0_i32_0 : i32, i32, i32, i32
  }
}

</mosaic_0001>

<bundles_post_ra>
// kernel: tpu_custom_call.1
= control target key start
LH: loop header
LB: loop body
LE: loop exit
PB: predicated region body
PF: predicated region fallthrough
CT: control target
= control target key end

     0   :  { %s2255_s0 = inlined_call_operand.vmem [shape: f32[2,3,18,128], index: 0, kind: input, shape index: {}]   ;;  %s2256_s1 = inlined_call_operand.vmem [shape: s32[2,1,20,128], index: 1, kind: input, shape index: {}]   ;;  %s2257_s2 = inlined_call_operand.vmem [shape: f32[135], index: 2, kind: input, shape index: {}]   ;;  %s2258_s3 = inlined_call_operand.vmem [shape: f32[3], index: 3, kind: input, shape index: {}]   ;;  %s2259_s4 = inlined_call_operand.hbm [shape: f32[2,3,16,128], index: 4, kind: output, shape index: {}]  }
   0x1   :  { %2269 = sst [smem:[#allocation16_spill]] %s2255_s0 }
   0x2   :  { %2270 = sst [smem:[#allocation17_spill]] %s2256_s1 }
   0x3   :  { %2271 = sst [smem:[#allocation18_spill]] %s2257_s2 }
   0x4   :  { %2272 = sst [smem:[#allocation19_spill]] %s2258_s3 }
   0x5   :  { %9 = vsyncpa [#allocation4], 0 }
   0x6   :  { %10 = vsyncpa [#allocation6], 0 }
   0x7   :  { %11 = vsyncpa [#allocation3], 0 }
   0x8   :  { %13 = vsyncpa [#allocation3 + $0x1], 0  ;;  %s1516_s15 = smov 0   ;;  %s1518_s16 = smov 0  }
   0x9   :  { %s1520_s17 = smov 0   ;;  %s1522_s18 = smov 0  }
   0xa   :  { %s1524_s19 = smov 0   ;;  %s1526_s20 = smov 0  }
   0xb   :  { %s1528_s21 = smov 0   ;;  %s1530_s22 = smov 0  }
   0xc LB: > { %2273 = sst [smem:[#allocation11_spill]] %s1455_s20  ;;  %s1103_s23 = sadd.s32 4294967295, %s1463_s22   ;;  %s1463_s22 = sphi %s1530_s22, %s19_s22   ;;  %s1459_s21 = sphi %s1528_s21, %s2317_s21   ;;  %s1455_s20 = sphi %s1526_s20, %s2316_s20   ;;  %s1451_s19 = sphi %s1524_s19, %s2315_s19   ;;  %s1447_s18 = sphi %s1522_s18, %s2314_s18   ;;  %s1443_s17 = sphi %s1520_s17, %s2320_s17   ;;  %s1439_s16 = sphi %s1518_s16, %s2319_s16   ;;  %s1435_s15 = sphi %s1516_s15, %s2318_s15  }
   0xd   : > { %2274 = sst [smem:[#allocation12_spill]] %s1459_s21  ;;  %s1104_s24 = sadd.s32 4294967294, %s1463_s22  }
   0xe   : > { %s28_s25 = sadd.s32 1, %s1455_s20  ;;  %s31_s26 = sadd.s32 1, %s1459_s21 }
   0xf   : > { %p29_p0 = scmp.ge.s32.totalorder %s28_s25, 2  ;;  %s134_s27 = sadd.s32 1, %s1443_s17 }
  0x10   : > { %p144_p1 = scmp.ne.s32.totalorder %s1443_s17, %s1439_s16  ;;  %p145_p2 = scmp.eq.s32.totalorder %s1103_s23, 3 }
  0x11   : > { %s2322_s25 = smov (%p29_p0, %s28_s25), 0  ;;  %s2324_s26 = smov (!%p29_p0, %s31_s26), %s1459_s21 }
  0x12   : > { %2275 = sst [smem:[#allocation13_spill]] %s2322_s25  ;;  %s130_s28 = ssub.s32 %s1455_s20, %s2322_s25 }
  0x13   : > { %p1568_p3 = por %p145_p2, %p144_p1  ;;  %p33_p4 = scmp.ge.s32.totalorder %s2324_s26, 2 }
  0x14   : > { %p150_p5 = scmp.ne.s32.totalorder %s1439_s16, %s1435_s15  ;;  %p151_p6 = scmp.eq.s32.totalorder %s1104_s24, 3 }
  0x15   : > { %s2276_s29 = scalar_select %p1568_p3, 1, 0 }
  0x16   : > { %p1105_p7 = scmp.ge.s32.totalorder %s1463_s22, 1  ;;  %s2326_s26 = smov (%p33_p4, %s2324_s26), 0 }
  0x17   : > { %2277 = sst [smem:[#allocation14_spill]] %s2326_s26  ;;  %p1577_p8 = por %p151_p6, %p150_p5 }
  0x18   : > { %p158_p9 = scmp.lt.s32.totalorder %s1463_s22, 5  ;;  %s129_s5 = ssub.s32 %s1459_s21, %s2326_s26 }
  0x19   : > { %s2278_s30 = scalar_select %p1577_p8, 1, 0 }
  0x1a   : > { %s131_s6 = sor.u32 %s130_s28, %s129_s5  ;;  %p1584_p10 = pnand %p1105_p7, %p158_p9 }
  0x1b   : > { %p132_p11 = scmp.eq.s32.totalorder %s131_s6, 0  ;;  %p1588_p12 = scmp.eq.s32.totalorder %s1103_s23, 0 }
  0x1c   : > { %s2279_s7 = scalar_select %p1584_p10, 1, 0 }
  0x1d   : > { %s2280_s8 = scalar_select %p1588_p12, 1, 0 }
  0x1e   : > { %p1188_p13 = pneg %p1584_p10  ;;  %s2281_s2 = sld [smem:[#allocation18_spill]] }
  0x1f   : > { %s1598_s12 = scalar_select %p132_p11, %s1443_s17, %s134_s27  }
  0x20   : > { %p1602_p0 = pnand %p1588_p12, %p1188_p13  ;;  %s2284_s3 = sld [smem:[#allocation19_spill]] }
  0x21   : > { %2282 = sst [smem:[#allocation15_spill]] %s1598_s12 }
  0x22   : > { %p1317_p2 = pneg %p1602_p0 }
  0x24   : > { %s171_s11 = sshll.u32 %s2281_s2, 4  ;;  %s172_s11 = int_to_ptr.vmem [resolvable:$true] %s171_s11 }
  0x25   : > { %s1315_s28 = scalar_lea.vmem %s172_s11, 32  ;;  %p1323_p6 = scmp.lt.s32.totalorder %s172_s11, %s172_s11 }
  0x26   : > { %s182_s24 = sshll.u32 %s2284_s3, 4  ;;  %p1316_p1 = scmp.ne.s32.totalorder %s172_s11, %s1315_s28  ;;  %s183_s24 = int_to_ptr.vmem [resolvable:$true] %s182_s24 }
  0x27   : > { %p1324_p7 = scmp.lt.s32.totalorder %s1315_s28, %s1315_s28 }
  0x28   : > { %p1318_p4 = pnand %p1317_p2, %p1316_p1 }
  0x29   : > { %p1325_p9 = por %p1324_p7, %p1323_p6 }
  0x2a   : > { %p1319_p5 = pneg %p1318_p4 }
  0x2c   : > { %p1326_p11 = pnand %p1325_p9, %p1319_p5 }
  0x2e   : > { %1329 = shalt.err (!%p1326_p11)
}
  0x2f   : > { %s1481_s27 = smov [#allocation2]   ;;  %s1330_s5 = scalar_lea.vmem %s183_s24, 16 }
  0x30   : > { %1191 = dma.vmem_to_smem (!%p1602_p0), %s172_s11, 32, %s1481_s27, [#allocation4]  }
  0x31   : > { %p1331_p13 = scmp.ne.s32.totalorder %s183_s24, %s1330_s5  ;;  %p1338_p12 = scmp.lt.s32.totalorder %s183_s24, %s183_s24 }
  0x32   : > { %p1339_p10 = scmp.lt.s32.totalorder %s1330_s5, %s1330_s5 }
  0x33   : > { %p1333_p8 = pnand %p1331_p13, %p1317_p2 }
  0x34   : > { %p1340_p1 = por %p1339_p10, %p1338_p12 }
  0x35   : > { %p1334_p3 = pneg %p1333_p8 }
  0x37   : > { %p1341_p4 = pnand %p1340_p1, %p1334_p3 }
  0x39   : > { %1344 = shalt.err (!%p1341_p4)
}
  0x3a   : > { %s1482_s6 = smov [#allocation5]   ;;  %p2285_p5 = scmp.ne.s32.totalorder %s2279_s7, 0 }
  0x3b   : > { %1194 = dma.vmem_to_smem (!%p1602_p0), %s183_s24, 16, %s1482_s6, [#allocation6]  }
  0x3c   : > { %211 = sbr.rel (%p2285_p5) target bundleno = 440 (0x1b8), region = 36  ;;  %p2286_p6 = scmp.ne.s32.totalorder (!%p2285_p5), %s2280_s8, 0 }
  0x43   : > { %1422 = dma.done.wait (%p2286_p6), [#allocation4], 32  }
  0x44   : > { %1424 = vsyncadd (%p2286_p6), [#allocation4], 4294967264 }
  0x45   : > { %1426 = dma.done.wait (%p2286_p6), [#allocation6], 16  }
  0x46   : > { %1428 = vsyncadd (%p2286_p6), [#allocation6], 4294967280 }
  0x47   : > { %221 = sfence }
  0x48   : > { %p247_p3 = scmp.lt.s32.totalorder %s1451_s19, 1  ;;  %s1628_s10 = sshll.u32 %s1447_s18, 3  ;;  %vm335_vm0 = vcmask 1046528   ;;  %v301_v15 = vlaneseq  ;;  %vm343_vm11 = vcmask 1040384   ;;  %v1485_v60 = vmov 0  }
  0x49   : > { %s2287_s1 = sld [smem:[#allocation17_spill]]  ;;  %s2288_s0 = sld [smem:[#allocation16_spill]] }
  0x4a   : > { %s248_s9 = scalar_select %p247_p3, %s1451_s19, 1  ;;  %v302_v27 = vshrl.u32 %v301_v15, 7  ;;  %v1671_v58 = vand.u32 127, %v301_v15 }
  0x4b   : > { %s1483_s6 = smov 127   ;;  %s1687_s13 = sld [smem:[#allocation2 + $0x82]] }
  0x4c   : > { %s1160_s7 = smul.u32 24, %s248_s9  ;;  %v303_v34 = vadd.s32 8, %v302_v27  ;;  %s1694_s14 = sld [smem:[#allocation2 + $0x2b]] }
  0x4d   : > { %s1159_s11 = smul.u32 72, %s248_s9  ;;  %s1484_s9 = smov 1  }
  0x4e   : > { %s1706_s28 = sld [smem:[#allocation2 + $0x7f]]  ;;  %s1710_s8 = sld [smem:[#allocation2 + $0x58]] }
  0x4f   : > { %s256_s23 = scalar_lea.vmem %s2287_s1, %s1160_s7  ;;  %s251_s27 = scalar_lea.vmem %s2288_s0, %s1159_s11 }
  0x50   : > { %s332_s24 = scalar_lea.vmem %s256_s23, %s1628_s10  ;;  %s258_s5 = scalar_lea.vmem %s251_s27, %s1628_s10 }
  0x51   : > { %v1637_v0 = vld [vmem:[%s332_s24] sm:$0xff]  ;;  %v1639_v1 = vld [vmem:[%s332_s24 + $0x8] sm:$0xf]  ;;  %v1120_v8 = vld [vmem:[%s258_s5 + $0x38] sm:$0x3]  ;;  %s1121_s7 = sadd.s32 4294967295, %s1628_s10 }
  0x52   : > { %v336_v2 = vrot.slane %v1637_v0, 1  ;;  %v1644_v3 = vrot.slane %v1639_v1, 1  ;;  %v260_v4 = vld [vmem:[%s258_s5 + $0x8] sm:$0x3]  ;;  %v1117_v6 = vld [vmem:[%s258_s5 + $0x20] sm:$0x3]  ;;  %v1171_v12 = vtrunc.f32 %v1120_v8  ;;  %v305_v40 = vstv %s1121_s7 }
  0x53   : > { %v259_v7 = vld [vmem:[%s258_s5] sm:$0xff]  ;;  %v1163_v9 = vtrunc.f32 %v260_v4  ;;  %v1167_v10 = vtrunc.f32 %v1117_v6  ;;  %v1116_v11 = vld [vmem:[%s258_s5 + $0x18] sm:$0xff]  ;;  %v1119_v14 = vld [vmem:[%s258_s5 + $0x30] sm:$0xff]  ;;  %v307_v42 = vadd.s32 %v305_v40, %v303_v34  ;;  %v306_v46 = vadd.s32 %v305_v40, %v302_v27  ;;  %s1679_s10 = sld [smem:[#allocation2 + $0x28]]  ;;  %s1681_s11 = sld [smem:[#allocation2 + $0x55]] }
  0x54   : > { %v1648_v5 = vsel %vm335_vm0, %v336_v2, %v1644_v3  ;;  %v1161_v13 = vtrunc.f32 %v259_v7  ;;  %v1172_v18 = vcvt.f32.s32 %v1171_v12  ;;  %v1165_v20 = vtrunc.f32 %v1116_v11  ;;  %s1696_s23 = sld [smem:[#allocation2 + $0x25]]  ;;  %s1704_s24 = sld [smem:[#allocation2 + $0x52]] }
  0x55   : > { %351 = vrot.lane.b32.xlu1 %v1648_v5, %s1483_s6  ;;  %339 = vrot.lane.b32.xlu0 %v1648_v5, %s1484_s9  ;;  %v1164_v16 = vcvt.f32.s32 %v1163_v9  ;;  %v1168_v17 = vcvt.f32.s32 %v1167_v10  ;;  %v1169_v23 = vtrunc.f32 %v1119_v14  ;;  %vm311_vm1 = vcmp.ge.s32.totalorder %v307_v42, 0  ;;  %s1712_s27 = sld [smem:[#allocation2 + $0x85]]  ;;  %s2264_s5 = sand.u32 1, %s1439_s16  }
  0x56   : > { %v1162_v19 = vcvt.f32.s32 %v1161_v13  ;;  %v280_v24 = vcvt.s32.f32 %v1172_v18  ;;  %v1166_v26 = vcvt.f32.s32 %v1165_v20  ;;  %vm313_vm2 = vcmp.lt.s32.totalorder %v307_v42, 16  ;;  %s1781_s7 = smul.u32 24, %s2264_s5  ;;  %s1805_s5 = sld [smem:[#allocation5 + $0x2]] }
  0x57   : > { %v264_v21 = vcvt.s32.f32 %v1164_v16  ;;  %v272_v22 = vcvt.s32.f32 %v1168_v17  ;;  %v1170_v30 = vcvt.f32.s32 %v1169_v23  ;;  %vm310_vm5 = vcmp.ge.s32.totalorder %v306_v46, 0  ;;  %vm1659_vm7 = vmand %vm311_vm1, %vm313_vm2  ;;  %s1807_s0 = sld [smem:[#allocation2 + $0x29]]  ;;  %s1809_s1 = sld [smem:[#allocation2 + $0x56]] }
  0x58   : > { %v263_v25 = vcvt.s32.f32 %v1162_v19  ;;  %v288_v31 = vmul.f32 0.114, %v280_v24  ;;  %v271_v32 = vcvt.s32.f32 %v1166_v26  ;;  %vm312_vm6 = vcmp.lt.s32.totalorder %v306_v46, 16  ;;  %s1811_s2 = sld [smem:[#allocation2 + $0x83]]  ;;  %s1813_s3 = sld [smem:[#allocation2 + $0x2c]] }
  0x59   : > { %353 = vrot.lane.b32.xlu1 %v1644_v3, %s1483_s6  ;;  %341 = vrot.lane.b32.xlu0 %v1644_v3, %s1484_s9  ;;  %v282_v28 = vmul.f32 0.2989, %v264_v21  ;;  %v284_v29 = vmul.f32 0.587, %v272_v22  ;;  %v279_v36 = vcvt.s32.f32 %v1170_v30  ;;  %vm314_vm10 = vmand %vm310_vm5, %vm312_vm6  ;;  %v363_v56 = vrot.slane %v1639_v1, 7  ;;  %s1815_s26 = sld [smem:[#allocation2 + $0x59]] }
  0x5a   : > { %v281_v33 = vmul.f32 0.2989, %v263_v25  ;;  %v283_v37 = vmul.f32 0.587, %v271_v32  ;;  %v362_v57 = vrot.slane %v1637_v0, 7  ;;  %v375_v61 = vsel %vm314_vm10, 1, %v1485_v60 }
  0x5b   : > { %v286_v35 = vadd.f32 %v284_v29, %v282_v28  ;;  %v287_v39 = vmul.f32 0.114, %v279_v36  ;;  %vm367_vm13 = vcmp.ne.s32.totalorder %v1637_v0, %v1648_v5  ;;  %v376_v63 = vsel %vm1659_vm7, 1, %v1485_v60  ;;  %s1817_s25 = sld [smem:[#allocation2 + $0x86]]  ;;  %s1821_s20 = sld [smem:[#allocation2 + $0x53]] }
  0x5c   : > { %v285_v41 = vadd.f32 %v283_v37, %v281_v33  ;;  %v364_v59 = vsel %vm343_vm11, %v362_v57, %v363_v56  ;;  %vm365_vm12 = vcmp.ne.s32.totalorder %v1637_v0, %v362_v57  ;;  %vm368_vm15 = vcmp.ne.s32.totalorder %v1639_v1, %v1644_v3  ;;  %s1819_s21 = sld [smem:[#allocation2 + $0x26]]  ;;  %s1823_s12 = sld [smem:[#allocation2 + $0x80]] }
  0x5d   : > { %v290_v38 = vadd.f32 %v288_v31, %v286_v35  ;;  %vm366_vm14 = vcmp.ne.s32.totalorder %v1639_v1, %v364_v59  ;;  %vm325_vm1 = vcmp.le.s32.totalorder %v1671_v58, 126  ;;  %v377_v6 = vrot.slane %v375_v61, 7  ;;  %vm1689_vm2 = vmor %vm365_vm12, %vm367_vm13 }
  0x5e   : > { %v289_v44 = vadd.f32 %v287_v39, %v285_v41  ;;  %v378_v3 = vrot.slane %v376_v63, 7  ;;  %vm1700_vm6 = vmor %vm366_vm14, %vm368_vm15  ;;  %v504_v15 = vstv %s1679_s10  ;;  %v1486_v16 = vmov 0.0   ;;  %s1783_s10 = sld [smem:[#allocation2 + $0x27]] }
  0x5f   : > { %v1175_v43 = vtrunc.f32 %v290_v38  ;;  %v516_v18 = vstv %s1681_s11  ;;  %v527_v19 = vstv %s1687_s13  ;;  %v426_v20 = vstv %s1696_s23  ;;  %s1785_s11 = sld [smem:[#allocation2 + $0x54]]  ;;  %s1787_s13 = sld [smem:[#allocation2 + $0x81]] }
  0x60   : > { %v1173_v47 = vtrunc.f32 %v289_v44  ;;  %v379_v13 = vsel %vm343_vm11, %v377_v6, %v378_v3  ;;  %v604_v21 = vstv %s1694_s14  ;;  %v437_v22 = vstv %s1704_s24  ;;  %s1791_s14 = sld [smem:[#allocation2 + $0x57]]  ;;  %s1793_s23 = sld [smem:[#allocation2 + $0x84]] }
  0x61   : > { %v1176_v45 = vcvt.f32.s32 %v1175_v43  ;;  %v448_v23 = vstv %s1706_s28  ;;  %v627_v24 = vstv %s1712_s27  ;;  %s1795_s24 = sld [smem:[#allocation2 + $0x24]]  ;;  %s1799_s28 = sld [smem:[#allocation5]] }
  0x62   : > { %v1174_v49 = vcvt.f32.s32 %v1173_v47  ;;  %s1803_s27 = sld [smem:[#allocation5 + $0x1]] }
  0x63   : > { %vm295_vm3 = vcmp.gt.s32.totalorder %v1176_v45, 0 }
  0x64   : > { %v296_v48 = vsel %vm295_vm3, %v1176_v45, 0  ;;  %vm293_vm8 = vcmp.gt.s32.totalorder %v1174_v49, 0  ;;  %vm318_vm3 = vcmp.ge.s32.totalorder %v1671_v58, 1 }
  0x65   : > { %vm299_vm4 = vcmp.lt.s32.totalorder %v296_v48, 3  ;;  %v294_v53 = vsel %vm293_vm8, %v1174_v49, 0  ;;  %vm380_vm8 = vcmp.ne.s32.totalorder %v377_v6, 0 }
  0x66   : > { %v300_v51 = vsel %vm299_vm4, %v296_v48, 3  ;;  %vm297_vm9 = vcmp.lt.s32.totalorder %v294_v53, 3 }
  0x67   : > { %v1665_v52 = vsel %vm1659_vm7, %v300_v51, 4  ;;  %v298_v54 = vsel %vm297_vm9, %v294_v53, 3 }
  0x68   : > { %v1667_v55 = vsel %vm314_vm10, %v298_v54, 4 }
  0xc7   : > { %v352_v62 = vpop.permute.xlu1 %351  ;;  %v340_v2 = vpop.permute.xlu0 %339 }
  0xc8   : > { %v355_v4 = vrot.slane %v352_v62, 7  ;;  %v344_v5 = vrot.slane %v340_v2, 7 }
  0xca   : > { %vm358_vm4 = vcmp.ne.s32.totalorder %v1637_v0, %v355_v4  ;;  %vm347_vm5 = vcmp.ne.s32.totalorder %v1637_v0, %v344_v5 }
  0xcb   : > { %vm360_vm7 = vmand %vm358_vm4, %vm325_vm1  ;;  %v354_v9 = vpop.permute.xlu1 %353  ;;  %v342_v10 = vpop.permute.xlu0 %341  ;;  %vm381_vm4 = vcmp.ne.s32.totalorder %v379_v13, 0 }
  0xcc   : > { %vm349_vm9 = vmand %vm347_vm5, %vm318_vm3  ;;  %v356_v0 = vrot.slane %v354_v9, 7  ;;  %v345_v11 = vrot.slane %v342_v10, 7 }
  0xcd   : > { %vm371_vm10 = vmor %vm1689_vm2, %vm349_vm9 }
  0xce   : > { %vm373_vm12 = vmor %vm371_vm10, %vm360_vm7  ;;  %v357_v12 = vsel %vm343_vm11, %v355_v4, %v356_v0  ;;  %v346_v14 = vsel %vm343_vm11, %v344_v5, %v345_v11  ;;  %vm609_vm10 = vcmask 1044480  }
  0xcf   : > { %vm382_vm13 = vmand %vm373_vm12, %vm380_vm8  ;;  %vm359_vm14 = vcmp.ne.s32.totalorder %v1639_v1, %v357_v12  ;;  %vm348_vm15 = vcmp.ne.s32.totalorder %v1639_v1, %v346_v14  ;;  %v616_v1 = vstv %s1710_s8  ;;  %vm509_vm8 = vcmask 1045504   ;;  %s1801_s8 = sld [smem:[#allocation2 + $0x7e]] }
  0xd0   : > { %v1122_v17 = vsel %vm382_vm13, 1.0, %v1486_v16  ;;  %vm361_vm2 = vmand %vm359_vm14, %vm325_vm1  ;;  %v471_v14 = vstv %s1783_s10 }
  0xd1   : > { %vm350_vm11 = vmand %vm348_vm15, %vm318_vm3  ;;  %v505_v25 = vmul.f32 %v1122_v17, %v504_v15  ;;  %v517_v26 = vmul.f32 %v1122_v17, %v516_v18  ;;  %v528_v27 = vmul.f32 %v1122_v17, %v527_v19  ;;  %v427_v28 = vmul.f32 %v1122_v17, %v426_v20 }
  0xd2   : > { %vm372_vm5 = vmor %vm1700_vm6, %vm350_vm11  ;;  %v605_v29 = vmul.f32 %v1122_v17, %v604_v21  ;;  %v438_v31 = vmul.f32 %v1122_v17, %v437_v22  ;;  %v449_v32 = vmul.f32 %v1122_v17, %v448_v23  ;;  %v617_v33 = vmul.f32 %v1122_v17, %v616_v1 }
  0xd3   : > { %vm374_vm7 = vmor %vm372_vm5, %vm361_vm2  ;;  %v390_v35 = vrot.slane %v1122_v17, 1  ;;  %v628_v37 = vmul.f32 %v1122_v17, %v627_v24  ;;  %v510_v40 = vrot.slane %v505_v25, 2  ;;  %v431_v42 = vrot.slane %v427_v28, 1 }
  0xd4   : > { %vm383_vm9 = vmand %vm374_vm7, %vm381_vm4  ;;  %v521_v44 = vrot.slane %v517_v26, 2  ;;  %v442_v45 = vrot.slane %v438_v31, 1  ;;  %v453_v47 = vrot.slane %v449_v32, 1  ;;  %v532_v57 = vrot.slane %v528_v27, 2 }
  0xd5   : > { %v1123_v30 = vsel %vm383_vm9, 1.0, %v1486_v16  ;;  %v610_v2 = vrot.slane %v605_v29, 3  ;;  %v621_v4 = vrot.slane %v617_v33, 3  ;;  %v632_v10 = vrot.slane %v628_v37, 3 }
  0xd6   : > { %v391_v34 = vrot.slane %v1123_v30, 1  ;;  %v428_v36 = vmul.f32 %v1123_v30, %v426_v20  ;;  %v439_v38 = vmul.f32 %v1123_v30, %v437_v22  ;;  %v450_v39 = vmul.f32 %v1123_v30, %v448_v23 }
  0xd7   : > { %v506_v50 = vmul.f32 %v1123_v30, %v504_v15  ;;  %v518_v51 = vmul.f32 %v1123_v30, %v516_v18  ;;  %v529_v53 = vmul.f32 %v1123_v30, %v527_v19  ;;  %v606_v59 = vmul.f32 %v1123_v30, %v604_v21 }
  0xd8   : > { %397 = vrot.lane.b32.xlu1 %v391_v34, %s1484_s9  ;;  %v392_v41 = vsel %vm335_vm0, %v390_v35, %v391_v34  ;;  %v432_v43 = vrot.slane %v428_v36, 1  ;;  %v443_v46 = vrot.slane %v439_v38, 1  ;;  %v454_v48 = vrot.slane %v450_v39, 1 }
  0xd9   : > { %395 = vrot.lane.b32.xlu0 %v392_v41, %s1484_s9  ;;  %v511_v60 = vrot.slane %v506_v50, 2  ;;  %v522_v61 = vrot.slane %v518_v51, 2  ;;  %v533_v62 = vrot.slane %v529_v53, 2  ;;  %v618_v63 = vmul.f32 %v1123_v30, %v616_v1 }
  0xda   : > { %v1742_v49 = vsel %vm335_vm0, %v431_v42, %v432_v43  ;;  %v1745_v54 = vsel %vm335_vm0, %v442_v45, %v443_v46  ;;  %v1748_v56 = vsel %vm335_vm0, %v453_v47, %v454_v48  ;;  %v611_v6 = vrot.slane %v606_v59, 3 }
  0xdb   : > { %v629_v5 = vmul.f32 %v1123_v30, %v627_v24  ;;  %v1753_v7 = vsel %vm509_vm8, %v510_v40, %v511_v60  ;;  %v1756_v3 = vsel %vm509_vm8, %v521_v44, %v522_v61  ;;  %v1759_v8 = vsel %vm509_vm8, %v532_v57, %v533_v62 }
  0xdc   : > { %403 = vrot.lane.b32.xlu1 %v391_v34, %s1483_s6  ;;  %v622_v9 = vrot.slane %v618_v63, 3  ;;  %v1762_v0 = vsel %vm609_vm10, %v610_v2, %v611_v6  ;;  %v482_v15 = vstv %s1785_s11  ;;  %v493_v16 = vstv %s1787_s13 }
  0xdd   : > { %401 = vrot.lane.b32.xlu0 %v392_v41, %s1483_s6  ;;  %v633_v11 = vrot.slane %v629_v5, 3  ;;  %v582_v18 = vstv %s1791_s14  ;;  %v593_v19 = vstv %s1793_s23  ;;  %v408_v21 = vstv %s1799_s28 }
  0xde   : > { %v1767_v12 = vsel %vm609_vm10, %v621_v4, %v622_v9  ;;  %v414_v22 = vstv %s1795_s24  ;;  %v422_v1 = vstv %s1801_s8  ;;  %v410_v25 = vstv %s1803_s27 }
  0xdf   : > { %v1772_v13 = vsel %vm609_vm10, %v632_v10, %v633_v11  ;;  %v412_v26 = vstv %s1805_s5  ;;  %v538_v28 = vstv %s1807_s0  ;;  %v549_v31 = vstv %s1809_s1  ;;  %s1928_s0 = scalar_lea.vmem [#allocation7], %s1781_s7  ;;  %s1936_s1 = smov 0  }
  0xe0   : > { %321 = vrot.lane.b32.xlu1 %v1665_v52, %s1484_s9  ;;  %v560_v32 = vstv %s1811_s2  ;;  %v638_v36 = vstv %s1813_s3  ;;  %v649_v37 = vstv %s1815_s26 }
  0xe1   : > { %319 = vrot.lane.b32.xlu0 %v1667_v55, %s1484_s9  ;;  %s1789_s9 = sld [smem:[#allocation2 + $0x2a]]  ;;  %v660_v38 = vstv %s1817_s25  ;;  %v459_v39 = vstv %s1819_s21  ;;  %v463_v40 = vstv %s1821_s20 }
  0xe2   : > { %v467_v44 = vstv %s1823_s12 }
  0xe4   : > { %328 = vrot.lane.b32.xlu1 %v1665_v52, %s1483_s6 }
  0xe5   : > { %326 = vrot.lane.b32.xlu0 %v1667_v55, %s1483_s6  ;;  %s1797_s6 = sld [smem:[#allocation2 + $0x51]] }
  0xe7   : > { %v571_v17 = vstv %s1789_s9 }
  0xeb   : > { %v418_v23 = vstv %s1797_s6 }
 0x14a   : > { %v398_v20 = vpop.permute.xlu1 %397 }
 0x14b   : > { %v400_v24 = vsel %vm318_vm3, %v398_v20, 0.0  ;;  %v396_v27 = vpop.permute.xlu0 %395 }
 0x14c   : > { %v1840_v29 = vmul.f32 %v471_v14, %v400_v24  ;;  %v1842_v30 = vmul.f32 %v482_v15, %v400_v24  ;;  %v573_v33 = vmul.f32 %v571_v17, %v400_v24  ;;  %v584_v34 = vmul.f32 %v582_v18, %v400_v24 }
 0x14d   : > { %v399_v35 = vsel %vm318_vm3, %v396_v27, 0.0  ;;  %v1853_v41 = vmul.f32 %v493_v16, %v400_v24  ;;  %v595_v42 = vmul.f32 %v593_v19, %v400_v24 }
 0x14e   : > { %v415_v43 = vmul.f32 %v414_v22, %v399_v35  ;;  %v477_v45 = vrot.slane %v1840_v29, 1  ;;  %v488_v46 = vrot.slane %v1842_v30, 1  ;;  %v419_v47 = vmul.f32 %v418_v23, %v399_v35  ;;  %v404_v50 = vpop.permute.xlu1 %403 }
 0x14f   : > { %v423_v48 = vmul.f32 %v422_v1, %v399_v35  ;;  %v577_v51 = vrot.slane %v573_v33, 2  ;;  %v588_v53 = vrot.slane %v584_v34, 2  ;;  %v572_v57 = vmul.f32 %v571_v17, %v399_v35 }
 0x150   : > { %v583_v59 = vmul.f32 %v582_v18, %v399_v35  ;;  %v416_v60 = vadd.f32 %v415_v43, %v408_v21  ;;  %v472_v61 = vmul.f32 %v471_v14, %v399_v35  ;;  %v483_v62 = vmul.f32 %v482_v15, %v399_v35  ;;  %v402_v18 = vpop.permute.xlu0 %401 }
 0x151   : > { %v494_v63 = vmul.f32 %v493_v16, %v399_v35  ;;  %v576_v2 = vrot.slane %v572_v57, 2  ;;  %v594_v6 = vmul.f32 %v593_v19, %v399_v35  ;;  %v406_v5 = vsel %vm325_vm1, %v404_v50, 0.0 }
 0x152   : > { %v587_v4 = vrot.slane %v583_v59, 2  ;;  %v420_v9 = vadd.f32 %v419_v47, %v410_v25  ;;  %v424_v10 = vadd.f32 %v423_v48, %v412_v26  ;;  %v540_v11 = vmul.f32 %v538_v28, %v406_v5  ;;  %v322_v1 = vpop.permute.xlu1 %321 }
 0x153   : > { %v551_v17 = vmul.f32 %v549_v31, %v406_v5  ;;  %v499_v20 = vrot.slane %v1853_v41, 1  ;;  %v599_v21 = vrot.slane %v595_v42, 2  ;;  %v562_v14 = vmul.f32 %v560_v32, %v406_v5 }
 0x154   : > { %v1869_v15 = vmul.f32 %v638_v36, %v406_v5  ;;  %v476_v16 = vrot.slane %v472_v61, 1  ;;  %v487_v19 = vrot.slane %v483_v62, 1  ;;  %v498_v22 = vrot.slane %v494_v63, 1  ;;  %v320_v35 = vpop.permute.xlu0 %319 }
 0x155   : > { %v578_v23 = vsel %vm509_vm8, %v576_v2, %v577_v51  ;;  %v589_v24 = vsel %vm509_vm8, %v587_v4, %v588_v53  ;;  %v598_v25 = vrot.slane %v594_v6, 2  ;;  %v544_v26 = vrot.slane %v540_v11, 1 }
 0x156   : > { %v651_v27 = vmul.f32 %v649_v37, %v406_v5  ;;  %v555_v29 = vrot.slane %v551_v17, 1  ;;  %v435_v30 = vadd.f32 %v1742_v49, %v416_v60  ;;  %v446_v33 = vadd.f32 %v1745_v54, %v420_v9  ;;  %v329_v4 = vpop.permute.xlu1 %328 }
 0x157   : > { %v457_v34 = vadd.f32 %v1748_v56, %v424_v10  ;;  %v566_v41 = vrot.slane %v562_v14, 1  ;;  %v644_v42 = vrot.slane %v1869_v15, 2  ;;  %v405_v43 = vsel %vm325_vm1, %v402_v18, 0.0 }
 0x158   : > { %v1883_v47 = vsel %vm318_vm3, %v322_v1, 4  ;;  %v460_v48 = vmul.f32 %v459_v39, %v405_v43  ;;  %v464_v50 = vmul.f32 %v463_v40, %v405_v43  ;;  %v468_v51 = vmul.f32 %v467_v44, %v405_v43 }
 0x159   : > { %v539_v49 = vmul.f32 %v538_v28, %v405_v43  ;;  %v600_v54 = vsel %vm509_vm8, %v598_v25, %v599_v21  ;;  %v478_v56 = vsel %vm335_vm0, %v476_v16, %v477_v45  ;;  %v550_v53 = vmul.f32 %v549_v31, %v405_v43 }
 0x15a   : > { %v561_v57 = vmul.f32 %v560_v32, %v405_v43  ;;  %v461_v59 = vadd.f32 %v460_v48, %v435_v30  ;;  %v465_v60 = vadd.f32 %v464_v50, %v446_v33  ;;  %v469_v61 = vadd.f32 %v468_v51, %v457_v34  ;;  %v327_v32 = vpop.permute.xlu0 %326 }
 0x15b   : > { %v543_v62 = vrot.slane %v539_v49, 1  ;;  %v489_v39 = vsel %vm335_vm0, %v487_v19, %v488_v46  ;;  %v500_v40 = vsel %vm335_vm0, %v498_v22, %v499_v20  ;;  %v554_v28 = vrot.slane %v550_v53, 1 }
 0x15c   : > { %v565_v44 = vrot.slane %v561_v57, 1  ;;  %v662_v63 = vmul.f32 %v660_v38, %v406_v5  ;;  %v480_v45 = vadd.f32 %v478_v56, %v461_v59  ;;  %v491_v2 = vadd.f32 %v489_v39, %v465_v60 }
 0x15d   : > { %v502_v31 = vadd.f32 %v500_v40, %v469_v61  ;;  %v545_v6 = vsel %vm335_vm0, %v543_v62, %v544_v26  ;;  %v556_v9 = vsel %vm335_vm0, %v554_v28, %v555_v29  ;;  %v639_v10 = vmul.f32 %v638_v36, %v405_v43 }
 0x15e   : > { %v650_v46 = vmul.f32 %v649_v37, %v405_v43  ;;  %v514_v11 = vadd.f32 %v1753_v7, %v480_v45  ;;  %v525_v17 = vadd.f32 %v1756_v3, %v491_v2  ;;  %v661_v5 = vmul.f32 %v660_v38, %v405_v43 }
 0x15f   : > { %v536_v18 = vadd.f32 %v1759_v8, %v502_v31  ;;  %v567_v20 = vsel %vm335_vm0, %v565_v44, %v566_v41  ;;  %v1911_v21 = vsel %vm318_vm3, %v320_v35, 4  ;;  %v1915_v14 = vsel %vm325_vm1, %v329_v4, 4 }
 0x160   : > { %v1919_v36 = vsel %vm325_vm1, %v327_v32, 4  ;;  %v655_v7 = vrot.slane %v651_v27, 2  ;;  %v547_v3 = vadd.f32 %v545_v6, %v514_v11  ;;  %v558_v37 = vadd.f32 %v556_v9, %v525_v17 }
 0x161   : > { %v569_v8 = vadd.f32 %v567_v20, %v536_v18  ;;  %v666_v15 = vrot.slane %v662_v63, 2  ;;  %v643_v38 = vrot.slane %v639_v10, 2  ;;  %v654_v16 = vrot.slane %v650_v46, 2 }
 0x162   : > { %v665_v19 = vrot.slane %v661_v5, 2  ;;  %v580_v22 = vadd.f32 %v578_v23, %v547_v3  ;;  %v591_v1 = vadd.f32 %v589_v24, %v558_v37 }
 0x163   : > { %v602_v25 = vadd.f32 %v600_v54, %v569_v8  ;;  %v645_v30 = vsel %vm509_vm8, %v643_v38, %v644_v42  ;;  %v656_v27 = vsel %vm509_vm8, %v654_v16, %v655_v7 }
 0x164   : > { %v614_v26 = vadd.f32 %v1762_v0, %v580_v22  ;;  %v625_v29 = vadd.f32 %v1767_v12, %v591_v1  ;;  %v667_v33 = vsel %vm509_vm8, %v665_v19, %v666_v15 }
 0x165   : > { %v636_v58 = vadd.f32 %v1772_v13, %v602_v25 }
 0x166   : > { %v647_v34 = vadd.f32 %v645_v30, %v614_v26   ;;  %v658_v35 = vadd.f32 %v656_v27, %v625_v29  }
 0x167   : > { %v669_v41 = vadd.f32 %v667_v33, %v636_v58  }
 0x168 LB: >> { %s1945_s2 = smul.u32 9, %s1479_s1  ;;  %v679_v0 = vstv %s1479_s1  ;;  %s675_s1 = sadd.s32 1, %s1479_s1   ;;  %s1479_s1 = sphi %s1936_s1, %s675_s1   ;;  %v1475_v34 = vphi %v647_v34, %v2309_v34   ;;  %v1471_v35 = vphi %v658_v35, %v2308_v35   ;;  %v1467_v41 = vphi %v669_v41, %v2307_v41  }
 0x169   : >> { %vm1954_vm1 = vcmp.eq.s32.totalorder %v1911_v21, %v679_v0  ;;  %vm1968_vm3 = vcmp.eq.s32.totalorder %v1667_v55, %v679_v0  ;;  %vm1988_vm6 = vcmp.eq.s32.totalorder %v1919_v36, %v679_v0  ;;  %vm2011_vm12 = vcmp.eq.s32.totalorder %v1883_v47, %v679_v0  ;;  %p672_p8 = scmp.ge.s32.totalorder %s675_s1, 4  }
 0x16a   : >> { %s682_s3 = sld [smem:[#allocation2 + %s1945_s2]]  ;;  %s686_s20 = sadd.s32 45, %s1945_s2  ;;  %vm2022_vm13 = vcmp.eq.s32.totalorder %v1665_v52, %v679_v0  ;;  %vm2033_vm14 = vcmp.eq.s32.totalorder %v1915_v14, %v679_v0 }
 0x16b   : >> { %s687_s21 = sld [smem:[#allocation2 + %s686_s20]]  ;;  %s691_s25 = sadd.s32 90, %s1945_s2 }
 0x16c   : >> { %s692_s26 = sld [smem:[#allocation2 + %s691_s25]]  ;;  %s697_s12 = sadd.s32 1, %s1945_s2 }
 0x16d   : >> { %s698_s5 = sld [smem:[#allocation2 + %s697_s12]]  ;;  %s702_s7 = sadd.s32 46, %s1945_s2 }
 0x16e   : >> { %s703_s10 = sld [smem:[#allocation2 + %s702_s7]]  ;;  %s707_s11 = sadd.s32 91, %s1945_s2 }
 0x16f   : >> { %s1959_s13 = sld [smem:[#allocation2 + %s707_s11]]  ;;  %s713_s9 = sadd.s32 2, %s1945_s2 }
 0x170   : >> { %v683_v13 = vstv %s682_s3  ;;  %s1962_s14 = sld [smem:[#allocation2 + %s713_s9]]  ;;  %s718_s23 = sadd.s32 47, %s1945_s2 }
 0x171   : >> { %v684_v23 = vsel %vm1954_vm1, %v683_v13, 0.0  ;;  %v688_v24 = vstv %s687_s21  ;;  %s1972_s24 = sld [smem:[#allocation2 + %s718_s23]]  ;;  %s723_s6 = sadd.s32 92, %s1945_s2 }
 0x172   : >> { %v685_v43 = vadd.f32 %v1475_v34, %v684_v23  ;;  %v689_v48 = vsel %vm1954_vm1, %v688_v24, 0.0  ;;  %v693_v50 = vstv %s692_s26  ;;  %s1977_s28 = sld [smem:[#allocation2 + %s723_s6]]  ;;  %s729_s8 = sadd.s32 3, %s1945_s2 }
 0x173   : >> { %v690_v51 = vadd.f32 %v1471_v35, %v689_v48  ;;  %v694_v49 = vsel %vm1954_vm1, %v693_v50, 0.0  ;;  %v699_v54 = vstv %s698_s5  ;;  %s1982_s27 = sld [smem:[#allocation2 + %s729_s8]]  ;;  %s741_s3 = sadd.s32 48, %s1945_s2 }
 0x174   : >> { %v695_v56 = vadd.f32 %v1467_v41, %v694_v49  ;;  %v700_v53 = vsel %vm1968_vm3, %v699_v54, 0.0  ;;  %v704_v57 = vstv %s703_s10  ;;  %s1992_s20 = sld [smem:[#allocation2 + %s741_s3]]  ;;  %s753_s21 = sadd.s32 93, %s1945_s2 }
 0x175   : >> { %v701_v60 = vadd.f32 %v700_v53, %v685_v43  ;;  %v705_v61 = vsel %vm1968_vm3, %v704_v57, 0.0  ;;  %v709_v62 = vstv %s1959_s13  ;;  %s1998_s25 = sld [smem:[#allocation2 + %s753_s21]]  ;;  %s766_s26 = sadd.s32 4, %s1945_s2 }
 0x176   : >> { %v706_v39 = vadd.f32 %v705_v61, %v690_v51  ;;  %v710_v40 = vsel %vm1968_vm3, %v709_v62, 0.0  ;;  %v715_v28 = vstv %s1962_s14  ;;  %s2004_s12 = sld [smem:[#allocation2 + %s766_s26]]  ;;  %s778_s5 = sadd.s32 49, %s1945_s2 }
 0x177   : >> { %v711_v44 = vadd.f32 %v710_v40, %v695_v56  ;;  %v716_v63 = vsel %vm1988_vm6, %v715_v28, 0.0  ;;  %v720_v45 = vstv %s1972_s24  ;;  %s2015_s7 = sld [smem:[#allocation2 + %s778_s5]]  ;;  %s790_s10 = sadd.s32 94, %s1945_s2 }
 0x178   : >> { %v721_v31 = vsel %vm1988_vm6, %v720_v45, 0.0  ;;  %v725_v4 = vstv %s1977_s28  ;;  %s803_s11 = sadd.s32 5, %s1945_s2  ;;  %v717_v6 = vadd.f32 %v716_v63, %v701_v60  ;;  %s2030_s13 = sld [smem:[#allocation2 + %s790_s10]] }
 0x179   : >> { %v722_v9 = vadd.f32 %v721_v31, %v706_v39  ;;  %v726_v10 = vsel %vm1988_vm6, %v725_v4, 0.0  ;;  %v731_v46 = vstv %s1982_s27  ;;  %s815_s9 = sadd.s32 50, %s1945_s2  ;;  %s2043_s14 = sld [smem:[#allocation2 + %s803_s11]] }
 0x17a   : >> { %v727_v17 = vadd.f32 %v726_v10, %v711_v44  ;;  %v732_v18 = vsel %vm1954_vm1, %v731_v46, 0.0  ;;  %v733_v5 = vsel %vm2011_vm12, %v731_v46, 0.0  ;;  %v743_v20 = vstv %s1992_s20  ;;  %s827_s23 = sadd.s32 95, %s1945_s2  ;;  %s2052_s24 = sld [smem:[#allocation2 + %s815_s9]] }
 0x17b   : >> { %v736_v7 = vrot.slane %v732_v18, 1  ;;  %v737_v3 = vrot.slane %v733_v5, 1  ;;  %v744_v37 = vsel %vm1954_vm1, %v743_v20, 0.0  ;;  %v745_v8 = vsel %vm2011_vm12, %v743_v20, 0.0  ;;  %s839_s6 = sadd.s32 6, %s1945_s2  ;;  %s2063_s28 = sld [smem:[#allocation2 + %s827_s23]] }
 0x17c   : >> { %v748_v15 = vrot.slane %v744_v37, 1  ;;  %v749_v38 = vrot.slane %v745_v8, 1  ;;  %v755_v16 = vstv %s1998_s25  ;;  %v768_v19 = vstv %s2004_s12  ;;  %s851_s8 = sadd.s32 51, %s1945_s2  ;;  %s2074_s27 = sld [smem:[#allocation2 + %s839_s6]] }
 0x17d   : >> { %v738_v22 = vsel %vm335_vm0, %v736_v7, %v737_v3  ;;  %v756_v1 = vsel %vm1954_vm1, %v755_v16, 0.0  ;;  %v757_v25 = vsel %vm2011_vm12, %v755_v16, 0.0  ;;  %v769_v26 = vsel %vm1968_vm3, %v768_v19, 0.0  ;;  %s863_s3 = sadd.s32 96, %s1945_s2  ;;  %s2078_s20 = sld [smem:[#allocation2 + %s851_s8]] }
 0x17e   : >> { %v740_v29 = vadd.f32 %v738_v22, %v717_v6  ;;  %v750_v58 = vsel %vm335_vm0, %v748_v15, %v749_v38  ;;  %v760_v30 = vrot.slane %v756_v1, 1  ;;  %v761_v27 = vrot.slane %v757_v25, 1  ;;  %s875_s21 = sadd.s32 7, %s1945_s2  ;;  %s2088_s25 = sld [smem:[#allocation2 + %s863_s3]] }
 0x17f   : >> { %v752_v33 = vadd.f32 %v750_v58, %v722_v9  ;;  %v770_v34 = vsel %vm2022_vm13, %v768_v19, 0.0  ;;  %v773_v35 = vrot.slane %v769_v26, 1  ;;  %v780_v41 = vstv %s2015_s7  ;;  %s887_s26 = sadd.s32 52, %s1945_s2  ;;  %s2099_s12 = sld [smem:[#allocation2 + %s875_s21]] }
 0x180   : >> { %v762_v0 = vsel %vm335_vm0, %v760_v30, %v761_v27  ;;  %v774_v13 = vrot.slane %v770_v34, 1  ;;  %v781_v23 = vsel %vm1968_vm3, %v780_v41, 0.0  ;;  %v782_v24 = vsel %vm2022_vm13, %v780_v41, 0.0  ;;  %s899_s5 = sadd.s32 97, %s1945_s2  ;;  %s2110_s7 = sld [smem:[#allocation2 + %s887_s26]] }
 0x181   : >> { %v764_v43 = vadd.f32 %v762_v0, %v727_v17  ;;  %v785_v48 = vrot.slane %v781_v23, 1  ;;  %v786_v50 = vrot.slane %v782_v24, 1  ;;  %v792_v51 = vstv %s2030_s13  ;;  %s911_s10 = sadd.s32 8, %s1945_s2  ;;  %s2114_s11 = sld [smem:[#allocation2 + %s899_s5]] }
 0x182   : >> { %v775_v49 = vsel %vm335_vm0, %v773_v35, %v774_v13  ;;  %v793_v54 = vsel %vm1968_vm3, %v792_v51, 0.0  ;;  %v794_v56 = vsel %vm2022_vm13, %v792_v51, 0.0  ;;  %v805_v53 = vstv %s2043_s14  ;;  %s923_s13 = sadd.s32 53, %s1945_s2  ;;  %s2124_s9 = sld [smem:[#allocation2 + %s911_s10]] }
 0x183   : >> { %v777_v57 = vadd.f32 %v775_v49, %v740_v29  ;;  %v787_v60 = vsel %vm335_vm0, %v785_v48, %v786_v50  ;;  %v797_v61 = vrot.slane %v793_v54, 1  ;;  %v798_v62 = vrot.slane %v794_v56, 1  ;;  %s935_s14 = sadd.s32 98, %s1945_s2  ;;  %s2135_s23 = sld [smem:[#allocation2 + %s923_s13]] }
 0x184   : >> { %v789_v39 = vadd.f32 %v787_v60, %v752_v33  ;;  %v806_v40 = vsel %vm1988_vm6, %v805_v53, 0.0  ;;  %v807_v28 = vsel %vm2033_vm14, %v805_v53, 0.0  ;;  %v817_v44 = vstv %s2052_s24  ;;  %s2145_s2 = sld [smem:[#allocation2 + %s935_s14]]  ;;  %s1177_s24 = smul.u32 (%p672_p8), 6, %s1451_s19 }
 0x185   : >> { %v799_v63 = vsel %vm335_vm0, %v797_v61, %v798_v62  ;;  %v810_v45 = vrot.slane %v806_v40, 1  ;;  %v811_v31 = vrot.slane %v807_v28, 1  ;;  %v818_v4 = vsel %vm1988_vm6, %v817_v44, 0.0  ;;  %s2310_s19 = sand.u32 (%p672_p8), 1, %s1439_s16   ;;  %p2311_p12 = scmp.ne.s32.totalorder (%p672_p8), %s2276_s29, 0 }
 0x186   : >> { %v801_v6 = vadd.f32 %v799_v63, %v764_v43  ;;  %v819_v9 = vsel %vm2033_vm14, %v817_v44, 0.0  ;;  %v822_v10 = vrot.slane %v818_v4, 1  ;;  %v829_v46 = vstv %s2063_s28  ;;  %s967_s6 = sadd.s32 (%p672_p8), %s1447_s18, %s1177_s24  ;;  %s970_s28 = sshll.u32 (%p672_p8), %s1928_s0, 4  ;;  %s2191_s28 = int_to_ptr.vmem [resolvable:$true] %s970_s28 }
 0x187   : >> { %v812_v17 = vsel %vm335_vm0, %v810_v45, %v811_v31  ;;  %v823_v18 = vrot.slane %v819_v9, 1  ;;  %v830_v5 = vsel %vm1988_vm6, %v829_v46, 0.0  ;;  %v831_v20 = vsel %vm2033_vm14, %v829_v46, 0.0  ;;  %s1155_s8 = sshll.u32 (%p672_p8), %s967_s6, 7  ;;  %s2203_s18 = scalar_lea.sflag (%p672_p8), [#allocation3], %s2310_s19 }
 0x188   : >> { %v814_v7 = vadd.f32 %v812_v17, %v777_v57  ;;  %v834_v3 = vrot.slane %v830_v5, 1  ;;  %v835_v37 = vrot.slane %v831_v20, 1  ;;  %v841_v8 = vstv %s2074_s27  ;;  %s2197_s3 = scalar_lea.hbm (%p672_p8), %s2259_s4, %s1155_s8  ;;  %s1487_s21 = smov (%p672_p8), [#allocation7]  }
 0x189   : >> { %v824_v15 = vsel %vm335_vm0, %v822_v10, %v823_v18  ;;  %v842_v38 = vsel %vm1954_vm1, %v841_v8, 0.0  ;;  %v843_v16 = vsel %vm2011_vm12, %v841_v8, 0.0  ;;  %v853_v19 = vstv %s2078_s20  ;;  %s1345_s20 = scalar_lea.vmem (%p672_p8), %s2191_s28, 384 }
 0x18a   : >> { %v826_v22 = vadd.f32 %v824_v15, %v789_v39  ;;  %v836_v1 = vsel %vm335_vm0, %v834_v3, %v835_v37  ;;  %v846_v25 = vrot.slane %v842_v38, 2  ;;  %v847_v26 = vrot.slane %v843_v16, 2  ;;  %p1346_p10 = scmp.ne.s32.totalorder (%p672_p8), %s2191_s28, %s1345_s20 }
 0x18b   : >> { %v838_v29 = vadd.f32 %v836_v1, %v801_v6  ;;  %v854_v58 = vsel %vm1954_vm1, %v853_v19, 0.0  ;;  %v855_v30 = vsel %vm2011_vm12, %v853_v19, 0.0  ;;  %v865_v27 = vstv %s2088_s25  ;;  %s1349_s25 = sshll.u32 (%p672_p8), %s1487_s21, 4  ;;  %s1350_s25 = int_to_ptr.vmem [resolvable:$false] %s1349_s25 }
 0x18c   : >> { %v848_v33 = vsel %vm509_vm8, %v846_v25, %v847_v26  ;;  %v858_v34 = vrot.slane %v854_v58, 2  ;;  %v859_v35 = vrot.slane %v855_v30, 2  ;;  %v866_v41 = vsel %vm1954_vm1, %v865_v27, 0.0  ;;  %p1347_p0 = pnand (%p672_p8), %p1346_p10, %p2311_p12  ;;  %s1351_s26 = scalar_lea.vmem (%p672_p8), %s1350_s25, 768 }
 0x18d   : >> { %v850_v0 = vadd.f32 %v848_v33, %v814_v7  ;;  %v867_v13 = vsel %vm2011_vm12, %v865_v27, 0.0  ;;  %v870_v23 = vrot.slane %v866_v41, 2  ;;  %v877_v24 = vstv %s2099_s12  ;;  %p1352_p7 = scmp.lt.s32.totalorder (%p672_p8), %s2191_s28, %s1350_s25  ;;  %p1353_p9 = scmp.lt.s32.totalorder (%p672_p8), %s1351_s26, %s1345_s20 }
 0x18e   : >> { %v860_v43 = vsel %vm509_vm8, %v858_v34, %v859_v35  ;;  %v871_v48 = vrot.slane %v867_v13, 2  ;;  %v878_v50 = vsel %vm1968_vm3, %v877_v24, 0.0  ;;  %v879_v51 = vsel %vm2022_vm13, %v877_v24, 0.0  ;;  %p1348_p2 = pneg (%p672_p8), %p1347_p0 }
 0x18f   : >> { %v862_v12 = vadd.f32 %v860_v43, %v826_v22  ;;  %v882_v49 = vrot.slane %v878_v50, 2  ;;  %v883_v54 = vrot.slane %v879_v51, 2  ;;  %v889_v2 = vstv %s2110_s7  ;;  %p1354_p11 = por (%p672_p8), %p1353_p9, %p1352_p7 }
 0x190   : >> { %v872_v56 = vsel %vm509_vm8, %v870_v23, %v871_v48  ;;  %v890_v53 = vsel %vm1968_vm3, %v889_v2, 0.0  ;;  %v891_v57 = vsel %vm2022_vm13, %v889_v2, 0.0  ;;  %v901_v60 = vstv %s2114_s11 }
 0x191   : >> { %v874_v61 = vadd.f32 %v872_v56, %v838_v29  ;;  %v884_v62 = vsel %vm509_vm8, %v882_v49, %v883_v54  ;;  %v894_v39 = vrot.slane %v890_v53, 2  ;;  %v895_v40 = vrot.slane %v891_v57, 2  ;;  %p1355_p13 = pnand (%p672_p8), %p1354_p11, %p1348_p2 }
 0x192   : >> { %v886_v28 = vadd.f32 %v884_v62, %v850_v0  ;;  %v902_v44 = vsel %vm1968_vm3, %v901_v60, 0.0  ;;  %v903_v63 = vsel %vm2022_vm13, %v901_v60, 0.0  ;;  %v913_v45 = vstv %s2124_s9 }
 0x193   : >> { %v896_v31 = vsel %vm509_vm8, %v894_v39, %v895_v40  ;;  %v906_v4 = vrot.slane %v902_v44, 2  ;;  %v907_v6 = vrot.slane %v903_v63, 2  ;;  %v914_v9 = vsel %vm1988_vm6, %v913_v45, 0.0 }
 0x194   : >> { %v898_v10 = vadd.f32 %v896_v31, %v862_v12  ;;  %v915_v46 = vsel %vm2033_vm14, %v913_v45, 0.0  ;;  %v918_v17 = vrot.slane %v914_v9, 2  ;;  %v925_v18 = vstv %s2135_s23 }
 0x195   : >> { %v908_v42 = vsel %vm509_vm8, %v906_v4, %v907_v6  ;;  %v919_v5 = vrot.slane %v915_v46, 2  ;;  %v926_v32 = vsel %vm1988_vm6, %v925_v18, 0.0  ;;  %v927_v20 = vsel %vm2033_vm14, %v925_v18, 0.0 }
 0x196   : >> { %v930_v7 = vrot.slane %v926_v32, 2  ;;  %v931_v3 = vrot.slane %v927_v20, 2  ;;  %v937_v37 = vstv %s2145_s2  ;;  %v910_v8 = vadd.f32 %v908_v42, %v874_v61 }
 0x197   : >> { %v920_v15 = vsel %vm509_vm8, %v918_v17, %v919_v5  ;;  %v938_v38 = vsel %vm1988_vm6, %v937_v37, 0.0  ;;  %v939_v16 = vsel %vm2033_vm14, %v937_v37, 0.0  ;;  %674 = sbr.rel (!%p672_p8) target bundleno = 360 (0x168), region = 96 }
 0x198   : >> { %v922_v19 = vadd.f32 %v920_v15, %v886_v28   ;;  %v932_v22 = vsel %vm509_vm8, %v930_v7, %v931_v3  ;;  %v942_v1 = vrot.slane %v938_v38, 2  ;;  %v943_v25 = vrot.slane %v939_v16, 2 }
 0x199   : >> { %v934_v26 = vadd.f32 %v932_v22, %v898_v10  }
 0x19a   : >> { %v944_v29 = vsel %vm509_vm8, %v942_v1, %v943_v25  ;;  %v2309_v34 = vmov %v922_v19  ;;  %1309 = vtanh.f32 (%p672_p8), %v922_v19 }
 0x19b   : >> { %v946_v58 = vadd.f32 %v944_v29, %v910_v8   ;;  %v2308_v35 = vmov %v934_v26  ;;  %1311 = vtanh.f32 (%p672_p8), %v934_v26 }
 0x19d   : >> { %v2307_v41 = vmov %v946_v58  ;;  %1313 = vtanh.f32 (%p672_p8), %v946_v58 }
 0x1a4   : > { %v1310_v59 = vpop.eup %1309 }
 0x1a5   : > { %v1312_v52 = vpop.eup %1311  ;;  %948 = vst [vmem:[%s1928_s0] sm:$0xff] %v1310_v59 }
 0x1a6   : > { %1153 = vst [vmem:[%s1928_s0 + $0x8] sm:$0xff] %v1312_v52 }
 0x1a7   : > { %v1314_v55 = vpop.eup %1313 }
 0x1a8   : > { %1154 = vst [vmem:[%s1928_s0 + $0x10] sm:$0xff] %v1314_v55 }
 0x1a9   : > { %1358 = shalt.err (!%p1355_p13)
}
 0x1aa   : > { %s1359_s0 = scalar_lea.hbm %s2197_s3, 384  ;;  %s1363_s7 = scalar_lea.hbm %s2259_s4, 1536 }
 0x1ab   : > { %p1360_p1 = scmp.ne.s32.totalorder %s2197_s3, %s1359_s0  ;;  %p1364_p6 = scmp.lt.u32.totalorder %s2197_s3, %s2259_s4 }
 0x1ac   : > { %p1365_p3 = scmp.lt.u32.totalorder %s1363_s7, %s1359_s0  ;;  %p1367_p10 = scmp.lt.u32.totalorder %s1359_s0, %s2197_s3 }
 0x1ad   : > { %p1361_p4 = pnand %p1360_p1, %p2311_p12 }
 0x1ae   : > { %p1366_p8 = por %p1365_p3, %p1364_p6 }
 0x1af   : > { %p1362_p5 = pneg %p1361_p4 }
 0x1b0   : > { %p1368_p0 = por %p1367_p10, %p1366_p8 }
 0x1b2   : > { %p1369_p2 = pnand %p1368_p0, %p1362_p5 }
 0x1b4   : > { %1372 = shalt.err (!%p1369_p2)
}
 0x1b5   : > { %s1488_s13 = smov 128   ;;  %s1489_s9 = smov 256  }
 0x1b6   : > { %s1490_s14 = smov 8  }
 0x1b7   : > { %1186 = dma.vmem_to_hbm [thread:$0]  (%p2311_p12), %s2191_s28, 384, %s2197_s3, %s2203_s18, %s1488_s13, %s1489_s9, %s1490_s14  }
 0x1b8 PF: > { %p1203_p7 = scmp.ge.s32.totalorder %s1463_s22, 2  ;;  %s985_s23 = sand.u32 1, %s1435_s15  }
 0x1b9   : > { %p2312_p9 = scmp.ne.s32.totalorder %s2278_s30, 0  ;;  %s986_s2 = scalar_lea.sflag [#allocation3], %s985_s23 }
 0x1bb   : > { %p1196_p11 = pnand %p1203_p7, %p2312_p9 }
 0x1bd   : > { %1430 = dma.done.wait (!%p1196_p11), %s986_s2, 384  }
 0x1be   : > { %1432 = vsyncadd (!%p1196_p11), %s986_s2, 4294966912  ;;  %s19_s22 = sadd.s32 1, %s1463_s22   ;;  %s2313_s24 = sld [smem:[#allocation15_spill]] }
 0x1bf   : > { %p16_p13 = scmp.ge.s32.totalorder %s19_s22, 6   ;;  %s2314_s18 = sld [smem:[#allocation11_spill]] }
 0x1c0   : > { %s2315_s19 = sld [smem:[#allocation12_spill]]  ;;  %s2316_s20 = sld [smem:[#allocation13_spill]] }
 0x1c1   : > { %s2317_s21 = sld [smem:[#allocation14_spill]]  ;;  %s2318_s15 = smov %s1439_s16 }
 0x1c2   : > { %s2319_s16 = smov %s1443_s17  ;;  %18 = sbr.rel (!%p16_p13) target bundleno = 12 (0xc), region = 107 }
 0x1c4   : > { %s2320_s17 = smov %s2313_s24 }
 0x1c9   :  { %991 = vsyncpa [#allocation3], 1 }
 0x1ca   :  { %993 = vsyncpa [#allocation3 + $0x1], 1 }
 0x1cb   :  { %994 = vsyncpa [#allocation4], 1 }
 0x1cc   :  { %996 = vsyncpa [#allocation4 + $0x1], 1 }
 0x1cd   :  { %997 = vsyncpa [#allocation6], 1 }

</bundles_post_ra>
